<compile_context>
chip_gen: v6e
topology: v6e:2x2x1
jax: 0.10.0
libtpu: 0.0.40
codegen_flags: <defaults>
</compile_context>

<pallas_src>
import jax
import jax.numpy as jnp
from jax.experimental import pallas as pl
from jax.experimental.pallas import tpu as pltpu


# --------------------------------------------------------------------------------------
# Kernel
# --------------------------------------------------------------------------------------
def gtcnn_kernel(x_in_ref, w1_ref, b1_ref, adj_ref, hsum_ref, w2_ref, b2_ref,
                 out_ref, xbuf_ref, ax_ref):
    """Grid = (num_layers, N/tile row tiles, N/tile contraction tiles).

    x_in_ref : (tile, F_in_p)   bf16   input chunk j (only used during layer 0, row sweep 0)
    w1_ref   : (F_in_p, hid_p)  bf16   lin_first weight
    b1_ref   : (1, hid_p)       f32    lin_first bias
    adj_ref  : (tile, tile)     bf16   Adj[row tile i, contraction tile j]
    hsum_ref : (1, hid_p, hid_p)bf16   sum_k H[l, k]  (K taps folded)
    w2_ref   : (hid_p, F_out_p) bf16   lin_last weight
    b2_ref   : (1, F_out_p)     f32    lin_last bias
    out_ref  : (tile, F_out_p)  f32    output row tile
    xbuf_ref : (2, n_tiles, tile, hid_p) bf16  ping-pong activations (read l%2, write (l+1)%2)
    ax_ref   : (tile, hid_p)    f32    Adj@x accumulator for the current row tile
    """
    l = pl.program_id(0)          # layer                (sequential)
    i = pl.program_id(1)          # output row tile      (sequential within a layer)
    j = pl.program_id(2)          # Adj contraction tile (reduction)
    n_l = pl.num_programs(0)
    n_j = pl.num_programs(2)

    # lin_first: during the very first row-tile sweep (layer 0, i == 0) produce the j-th
    # activation chunk x0[j] = x_in[j] @ W1 + b1 just before it is consumed below.
    @pl.when((l == 0) & (i == 0))
    def _():
        x0 = jnp.dot(x_in_ref[...], w1_ref[...],
                     preferred_element_type=jnp.float32) + b1_ref[...]
        xbuf_ref[0, j] = x0.astype(xbuf_ref.dtype)

    # Start of a contraction sweep: clear the f32 accumulator.
    @pl.when(j == 0)
    def _():
        ax_ref[...] = jnp.zeros_like(ax_ref)

    # Accumulate (Adj @ x)[row tile i] over contraction chunk j (bf16 MXU, f32 accum).
    src = l % 2
    ax_ref[...] += jnp.dot(adj_ref[...], xbuf_ref[src, j],
                           preferred_element_type=jnp.float32)

    # End of the contraction sweep: apply the K-folded graph filter + tanh, stash the new
    # activations for this row tile in the other ping-pong buffer; on the last layer also
    # apply lin_last and emit the (lane-dense) output row tile.
    @pl.when(j == n_j - 1)
    def _():
        h_sum = hsum_ref[0]                                       # (hid_p, hid_p) bf16
        y = jnp.tanh(jnp.dot(ax_ref[...].astype(h_sum.dtype), h_sum,
                             preferred_element_type=jnp.float32))  # f32
        xbuf_ref[(l + 1) % 2, i] = y.astype(xbuf_ref.dtype)

        @pl.when(l == n_l - 1)
        def _():
            out_ref[...] = (jnp.dot(y.astype(w2_ref.dtype), w2_ref[...],
                                    preferred_element_type=jnp.float32)
                            + b2_ref[...])


# --------------------------------------------------------------------------------------
# Wrapper: K-fold, padding to lane-dense shapes, bf16 casts, pallas_call
# --------------------------------------------------------------------------------------
def gtcnn_forward(x, W1, b1, Adj, H, W2, b2, *, tile=128):
    """x: (N, F_in) f32; W1: (F_in, hidden); b1: (hidden,); Adj: (N, N);
    H: (L, K, hidden, hidden); W2: (hidden, F_out); b2: (F_out,).  Returns (N, F_out) f32."""
    f32, bf16 = jnp.float32, jnp.bfloat16
    N, F_in = x.shape
    hidden = W1.shape[1]
    F_out = W2.shape[1]
    num_layers = H.shape[0]

    # Fold the K taps: every tap multiplies the same Adj@x, so sum_k (Adj@x)@H[l,k]
    # == (Adj@x) @ (sum_k H[l,k]).  Cuts the filter matmul count by K.
    H_sum = jnp.sum(H.astype(f32), axis=1)                         # (L, hidden, hidden)

    LANE = 128
    rup = lambda v, m: ((v + m - 1) // m) * m
    N_p = rup(N, tile)
    F_in_p = rup(F_in, LANE)
    hid_p = rup(hidden, LANE)
    F_out_p = rup(F_out, LANE)

    def pad2(a, r, c):
        return jnp.pad(a, ((0, r - a.shape[0]), (0, c - a.shape[1])))

    # Zero padding is exact: padded weight rows/cols are zero and tanh(0)=0, so padded
    # lanes/rows stay zero and never contaminate real entries.
    x_p = pad2(x.astype(f32), N_p, F_in_p).astype(bf16)
    W1_p = pad2(W1.astype(f32), F_in_p, hid_p).astype(bf16)
    b1_p = jnp.pad(b1.astype(f32), (0, hid_p - hidden)).reshape(1, hid_p)
    Adj_p = pad2(Adj.astype(f32), N_p, N_p).astype(bf16)
    Hsum_p = jnp.pad(H_sum, ((0, 0), (0, hid_p - hidden), (0, hid_p - hidden))).astype(bf16)
    W2_p = pad2(W2.astype(f32), hid_p, F_out_p).astype(bf16)
    b2_p = jnp.pad(b2.astype(f32), (0, F_out_p - F_out)).reshape(1, F_out_p)

    n_tiles = N_p // tile
    grid = (num_layers, n_tiles, n_tiles)

    out_p = pl.pallas_call(
        gtcnn_kernel,
        out_shape=jax.ShapeDtypeStruct((N_p, F_out_p), f32),
        grid_spec=pltpu.PrefetchScalarGridSpec(
            num_scalar_prefetch=0,
            grid=grid,
            in_specs=[
                pl.BlockSpec((tile, F_in_p), lambda l, i, j: (j, 0)),        # x_in chunks
                pl.BlockSpec((F_in_p, hid_p), lambda l, i, j: (0, 0)),       # W1 (resident)
                pl.BlockSpec((1, hid_p), lambda l, i, j: (0, 0)),            # b1 (resident)
                pl.BlockSpec((tile, tile), lambda l, i, j: (i, j)),          # Adj tile (streamed)
                pl.BlockSpec((1, hid_p, hid_p), lambda l, i, j: (l, 0, 0)),  # H_sum[l]
                pl.BlockSpec((hid_p, F_out_p), lambda l, i, j: (0, 0)),      # W2 (resident)
                pl.BlockSpec((1, F_out_p), lambda l, i, j: (0, 0)),          # b2 (resident)
            ],
            out_specs=pl.BlockSpec((tile, F_out_p), lambda l, i, j: (i, 0)),
            scratch_shapes=[
                pltpu.VMEM((2, n_tiles, tile, hid_p), bf16),  # ping-pong activations
                pltpu.VMEM((tile, hid_p), f32),               # Adj@x accumulator
            ],
        ),
        compiler_params=pltpu.CompilerParams(
            # Layers and the contraction are sequential; the row-tile axis carries the
            # per-layer activation scratch across iterations, so it cannot be megacore-
            # sharded either -> all "arbitrary".
            dimension_semantics=("arbitrary", "arbitrary", "arbitrary"),
            vmem_limit_bytes=48 * 1024 * 1024,
        ),
    )(x_p, W1_p, b1_p, Adj_p, Hsum_p, W2_p, b2_p)

    return out_p[:N, :F_out]


# --------------------------------------------------------------------------------------
# Plain-JAX glue matching the module __init__ (normalization + kron product graph)
# --------------------------------------------------------------------------------------
def normalize_adj(A):
    # D^{-1/2} A D^{-1/2} / 2, matching the numpy code in GTCNN.__init__.
    deg = jnp.sum(A, axis=1)
    d_inv_sqrt = 1.0 / jnp.sqrt(jnp.maximum(deg, 1e-12))  # guard: original assumes deg > 0
    return (A * d_inv_sqrt[:, None] * d_inv_sqrt[None, :]) / 2.0


def build_product_adj(Adj_t, Adj_s, s):
    T, S = Adj_t.shape[0], Adj_s.shape[0]
    At, As = normalize_adj(Adj_t), normalize_adj(Adj_s)
    I_t, I_s, I_st = jnp.eye(T, dtype=jnp.float32), jnp.eye(S, dtype=jnp.float32), jnp.eye(T * S, dtype=jnp.float32)
    return (s[0] * I_st
            + s[1] * jnp.kron(I_t, As)
            + s[2] * jnp.kron(At, I_s)
            + s[3] * jnp.kron(At, As))


def ring_plus_random_adj(key, n):
    # Symmetric adjacency: ring (guarantees positive degree) + a few random edges.
    idx = jnp.arange(n)
    A = jnp.zeros((n, n), dtype=jnp.float32)
    A = A.at[idx, (idx + 1) % n].set(1.0)
    A = A.at[(idx + 1) % n, idx].set(1.0)
    rnd = (jax.random.uniform(key, (n, n)) > 0.8).astype(jnp.float32)
    rnd = jnp.triu(rnd, k=2)
    return jnp.clip(A + rnd + rnd.T, 0.0, 1.0)


def reference_forward(x, W1, b1, Adj, H, W2, b2):
    # Full-precision reference with the original K-loop structure (torch forward).
    num_layers, K = H.shape[0], H.shape[1]
    h = x @ W1 + b1
    for l in range(num_layers):
        acc = jnp.zeros_like(h)
        ax = Adj @ h
        for k in range(K):
            acc = acc + ax @ H[l, k]
        h = jnp.tanh(acc)
    return h @ W2 + b2


# --------------------------------------------------------------------------------------
if __name__ == "__main__":
    # Small shapes consistent with the module; N = T*S product-graph nodes.
    T, S = 8, 32                      # -> N = 256 (two 128-row tiles, two contraction tiles)
    N = T * S
    K = 3
    F_in, hidden_f, F_out = 8, 32, 8
    num_layers = 2

    key = jax.random.PRNGKey(0)
    k_at, k_as, k_x, k_w1, k_b1, k_w2, k_b2, k_H, k_s = jax.random.split(key, 9)

    Adj_t = ring_plus_random_adj(k_at, T)
    Adj_s = ring_plus_random_adj(k_as, S)

    # Parameters (deterministic synthetic init; the nn.Parameter tensors in the original
    # module are uninitialized).  nn.Linear stores (out, in); here weights are generated
    # directly in (in, out) layout, i.e. weight.T.
    W1 = jax.random.normal(k_w1, (F_in, hidden_f), jnp.float32) * 0.1
    b1 = jax.random.normal(k_b1, (hidden_f,), jnp.float32) * 0.1
    W2 = jax.random.normal(k_w2, (hidden_f, F_out), jnp.float32) * 0.1
    b2 = jax.random.normal(k_b2, (F_out,), jnp.float32) * 0.1
    H = jax.random.normal(k_H, (num_layers, K, hidden_f, hidden_f), jnp.float32) * 0.1
    s_param = jax.random.normal(k_s, (4,), jnp.float32) * 0.5

    Adj = build_product_adj(Adj_t, Adj_s, s_param).astype(jnp.float32)
    x = jax.random.normal(k_x, (N, F_in), jnp.float32)

    out = gtcnn_forward(x, W1, b1, Adj, H, W2, b2)
    out = jax.block_until_ready(out)

    ref = reference_forward(x, W1, b1.reshape(1, -1), Adj, H, W2, b2.reshape(1, -1))
    assert out.shape == (N, F_out)
    # bf16 MXU operands with f32 accumulation vs. a full-f32 reference.
    assert jnp.allclose(out, ref, atol=3e-2, rtol=3e-2), "mismatch vs JAX reference"

    print("KERNEL_OK")
</pallas_src>

<mosaic_0001>
module attributes {stable_mosaic.version = 11 : i64} {
  func.func @gtcnn_kernel(%arg0: i32, %arg1: i32, %arg2: i32, %arg3: memref<128x128xbf16, #tpu.memory_space<vmem>>, %arg4: memref<128x128xbf16, #tpu.memory_space<vmem>>, %arg5: memref<1x128xf32, #tpu.memory_space<vmem>>, %arg6: memref<128x128xbf16, #tpu.memory_space<vmem>>, %arg7: memref<1x128x128xbf16, #tpu.memory_space<vmem>>, %arg8: memref<128x128xbf16, #tpu.memory_space<vmem>>, %arg9: memref<1x128xf32, #tpu.memory_space<vmem>>, %arg10: memref<128x128xf32, #tpu.memory_space<vmem>>, %arg11: memref<2x2x128x128xbf16, #tpu.memory_space<vmem>>, %arg12: memref<128x128xf32, #tpu.memory_space<vmem>>) attributes {dimension_semantics = [#tpu.dimension_semantics<arbitrary>, #tpu.dimension_semantics<arbitrary>, #tpu.dimension_semantics<arbitrary>], iteration_bounds = array<i64: 2, 2, 2>, scalar_prefetch = 0 : i64, scratch_operands = 2 : i64, tpu.core_type = #tpu.core_type<tc>, window_params = [{transform_indices = @transform_0, window_bounds = array<i64: 128, 128>}, {pipeline_mode = #tpu.pipeline_mode<synchronous>, transform_indices = @transform_1, window_bounds = array<i64: 128, 128>}, {pipeline_mode = #tpu.pipeline_mode<synchronous>, transform_indices = @transform_2, window_bounds = array<i64: 1, 128>}, {transform_indices = @transform_3, window_bounds = array<i64: 128, 128>}, {transform_indices = @transform_4, window_bounds = array<i64: 1, 128, 128>}, {pipeline_mode = #tpu.pipeline_mode<synchronous>, transform_indices = @transform_5, window_bounds = array<i64: 128, 128>}, {pipeline_mode = #tpu.pipeline_mode<synchronous>, transform_indices = @transform_6, window_bounds = array<i64: 1, 128>}, {transform_indices = @transform_7, window_bounds = array<i64: 128, 128>}]} {
    %c0_i32 = arith.constant 0 : i32
    %0 = arith.cmpi eq, %arg0, %c0_i32 : i32
    %c0_i32_0 = arith.constant 0 : i32
    %1 = arith.cmpi eq, %arg1, %c0_i32_0 : i32
    %2 = arith.andi %0, %1 : i1
    %3 = arith.extui %2 : i1 to i32
    %c0_i32_1 = arith.constant 0 : i32
    %4 = arith.cmpi ne, %3, %c0_i32_1 : i32
    scf.if %4 {
      %c0_17 = arith.constant 0 : index
      %c0_18 = arith.constant 0 : index
      %30 = vector.load %arg3[%c0_17, %c0_18] : memref<128x128xbf16, #tpu.memory_space<vmem>>, vector<128x128xbf16>
      %c0_19 = arith.constant 0 : index
      %c0_20 = arith.constant 0 : index
      %31 = vector.load %arg4[%c0_19, %c0_20] : memref<128x128xbf16, #tpu.memory_space<vmem>>, vector<128x128xbf16>
      %cst_21 = arith.constant dense<0.000000e+00> : vector<128x128xf32>
      %32 = tpu.matmul %30, %31, %cst_21 {dimension_numbers = #tpu.dot_dimension_numbers<[1], [0], [0], [1], [0, 0, 1, 1], [], []>} : vector<128x128xbf16>, vector<128x128xbf16>, vector<128x128xf32> -> vector<128x128xf32>
      %c0_22 = arith.constant 0 : index
      %c0_23 = arith.constant 0 : index
      %33 = vector.load %arg5[%c0_22, %c0_23] : memref<1x128xf32, #tpu.memory_space<vmem>>, vector<1x128xf32>
      %34 = vector.broadcast %33 : vector<1x128xf32> to vector<128x128xf32>
      %35 = arith.addf %32, %34 : vector<128x128xf32>
      %36 = arith.truncf %35 : vector<128x128xf32> to vector<128x128xbf16>
      %c0_24 = arith.constant 0 : index
      %37 = arith.index_cast %arg2 : i32 to index
      %c0_25 = arith.constant 0 : index
      %c0_26 = arith.constant 0 : index
      %38 = vector.load %arg11[%c0_24, %37, %c0_25, %c0_26] : memref<2x2x128x128xbf16, #tpu.memory_space<vmem>>, vector<1x1x128x128xbf16>
      %39 = vector.shape_cast %38 : vector<1x1x128x128xbf16> to vector<128x128xbf16>
      %40 = vector.shape_cast %36 : vector<128x128xbf16> to vector<1x1x128x128xbf16>
      tpu.vector_store %arg11[%c0_24, %37, %c0_25, %c0_26], %40 {strides = array<i32>} : memref<2x2x128x128xbf16, #tpu.memory_space<vmem>>, vector<1x1x128x128xbf16>,
    } else {
    }
    %c0_i32_2 = arith.constant 0 : i32
    %5 = arith.cmpi eq, %arg2, %c0_i32_2 : i32
    %6 = arith.extui %5 : i1 to i32
    %c0_i32_3 = arith.constant 0 : i32
    %7 = arith.cmpi ne, %6, %c0_i32_3 : i32
    scf.if %7 {
      %cst_17 = arith.constant 0.000000e+00 : f32
      %30 = vector.broadcast %cst_17 : f32 to vector<128x128xf32>
      %c0_18 = arith.constant 0 : index
      %c0_19 = arith.constant 0 : index
      %31 = vector.load %arg12[%c0_18, %c0_19] : memref<128x128xf32, #tpu.memory_space<vmem>>, vector<128x128xf32>
      tpu.vector_store %arg12[%c0_18, %c0_19], %30 {strides = array<i32>} : memref<128x128xf32, #tpu.memory_space<vmem>>, vector<128x128xf32>,
    } else {
    }
    %c2_i32 = arith.constant 2 : i32
    %c0_i32_4 = arith.constant 0 : i32
    %8 = arith.cmpi eq, %c2_i32, %c0_i32_4 : i32
    %c1_i32 = arith.constant 1 : i32
    %9 = arith.select %8, %c1_i32, %c2_i32 : i32
    %10 = arith.remsi %arg0, %9 : i32
    %c0_i32_5 = arith.constant 0 : i32
    %11 = arith.cmpi ne, %10, %c0_i32_5 : i32
    %c0_i32_6 = arith.constant 0 : i32
    %12 = arith.cmpi slt, %10, %c0_i32_6 : i32
    %c0_i32_7 = arith.constant 0 : i32
    %13 = arith.cmpi slt, %9, %c0_i32_7 : i32
    %14 = arith.xori %12, %13 : i1
    %15 = arith.andi %14, %11 : i1
    %16 = arith.addi %10, %9 : i32
    %17 = arith.select %15, %16, %10 : i32
    %c0 = arith.constant 0 : index
    %c0_8 = arith.constant 0 : index
    %18 = vector.load %arg12[%c0, %c0_8] : memref<128x128xf32, #tpu.memory_space<vmem>>, vector<128x128xf32>
    %c0_9 = arith.constant 0 : index
    %c0_10 = arith.constant 0 : index
    %19 = vector.load %arg6[%c0_9, %c0_10] : memref<128x128xbf16, #tpu.memory_space<vmem>>, vector<128x128xbf16>
    %20 = arith.index_cast %17 : i32 to index
    %21 = arith.index_cast %arg2 : i32 to index
    %c0_11 = arith.constant 0 : index
    %c0_12 = arith.constant 0 : index
    %22 = vector.load %arg11[%20, %21, %c0_11, %c0_12] : memref<2x2x128x128xbf16, #tpu.memory_space<vmem>>, vector<1x1x128x128xbf16>
    %23 = vector.shape_cast %22 : vector<1x1x128x128xbf16> to vector<128x128xbf16>
    %cst = arith.constant dense<0.000000e+00> : vector<128x128xf32>
    %24 = tpu.matmul %19, %23, %cst {dimension_numbers = #tpu.dot_dimension_numbers<[1], [0], [0], [1], [0, 0, 1, 1], [], []>} : vector<128x128xbf16>, vector<128x128xbf16>, vector<128x128xf32> -> vector<128x128xf32>
    %25 = arith.addf %18, %24 : vector<128x128xf32>
    %c0_13 = arith.constant 0 : index
    %c0_14 = arith.constant 0 : index
    %26 = vector.load %arg12[%c0_13, %c0_14] : memref<128x128xf32, #tpu.memory_space<vmem>>, vector<128x128xf32>
    tpu.vector_store %arg12[%c0_13, %c0_14], %25 {strides = array<i32>} : memref<128x128xf32, #tpu.memory_space<vmem>>, vector<128x128xf32>,
    %c1_i32_15 = arith.constant 1 : i32
    %27 = arith.cmpi eq, %arg2, %c1_i32_15 : i32
    %28 = arith.extui %27 : i1 to i32
    %c0_i32_16 = arith.constant 0 : i32
    %29 = arith.cmpi ne, %28, %c0_i32_16 : i32
    scf.if %29 {
      %c0_17 = arith.constant 0 : index
      %c0_18 = arith.constant 0 : index
      %c0_19 = arith.constant 0 : index
      %30 = vector.load %arg7[%c0_17, %c0_18, %c0_19] : memref<1x128x128xbf16, #tpu.memory_space<vmem>>, vector<1x128x128xbf16>
      %31 = vector.shape_cast %30 : vector<1x128x128xbf16> to vector<128x128xbf16>
      %c0_20 = arith.constant 0 : index
      %c0_21 = arith.constant 0 : index
      %32 = vector.load %arg12[%c0_20, %c0_21] : memref<128x128xf32, #tpu.memory_space<vmem>>, vector<128x128xf32>
      %33 = arith.truncf %32 : vector<128x128xf32> to vector<128x128xbf16>
      %cst_22 = arith.constant dense<0.000000e+00> : vector<128x128xf32>
      %34 = tpu.matmul %33, %31, %cst_22 {dimension_numbers = #tpu.dot_dimension_numbers<[1], [0], [0], [1], [0, 0, 1, 1], [], []>} : vector<128x128xbf16>, vector<128x128xbf16>, vector<128x128xf32> -> vector<128x128xf32>
      %35 = math.tanh %34 : vector<128x128xf32>
      %36 = arith.truncf %35 : vector<128x128xf32> to vector<128x128xbf16>
      %c1_i32_23 = arith.constant 1 : i32
      %37 = arith.addi %arg0, %c1_i32_23 : i32
      %c2_i32_24 = arith.constant 2 : i32
      %c0_i32_25 = arith.constant 0 : i32
      %38 = arith.cmpi eq, %c2_i32_24, %c0_i32_25 : i32
      %c1_i32_26 = arith.constant 1 : i32
      %39 = arith.select %38, %c1_i32_26, %c2_i32_24 : i32
      %40 = arith.remsi %37, %39 : i32
      %c0_i32_27 = arith.constant 0 : i32
      %41 = arith.cmpi ne, %40, %c0_i32_27 : i32
      %c0_i32_28 = arith.constant 0 : i32
      %42 = arith.cmpi slt, %40, %c0_i32_28 : i32
      %c0_i32_29 = arith.constant 0 : i32
      %43 = arith.cmpi slt, %39, %c0_i32_29 : i32
      %44 = arith.xori %42, %43 : i1
      %45 = arith.andi %44, %41 : i1
      %46 = arith.addi %40, %39 : i32
      %47 = arith.select %45, %46, %40 : i32
      %48 = arith.index_cast %47 : i32 to index
      %49 = arith.index_cast %arg1 : i32 to index
      %c0_30 = arith.constant 0 : index
      %c0_31 = arith.constant 0 : index
      %50 = vector.load %arg11[%48, %49, %c0_30, %c0_31] : memref<2x2x128x128xbf16, #tpu.memory_space<vmem>>, vector<1x1x128x128xbf16>
      %51 = vector.shape_cast %50 : vector<1x1x128x128xbf16> to vector<128x128xbf16>
      %52 = vector.shape_cast %36 : vector<128x128xbf16> to vector<1x1x128x128xbf16>
      tpu.vector_store %arg11[%48, %49, %c0_30, %c0_31], %52 {strides = array<i32>} : memref<2x2x128x128xbf16, #tpu.memory_space<vmem>>, vector<1x1x128x128xbf16>,
      %c1_i32_32 = arith.constant 1 : i32
      %53 = arith.cmpi eq, %arg0, %c1_i32_32 : i32
      %54 = arith.extui %53 : i1 to i32
      %c0_i32_33 = arith.constant 0 : i32
      %55 = arith.cmpi ne, %54, %c0_i32_33 : i32
      scf.if %55 {
        %56 = arith.truncf %35 : vector<128x128xf32> to vector<128x128xbf16>
        %c0_34 = arith.constant 0 : index
        %c0_35 = arith.constant 0 : index
        %57 = vector.load %arg8[%c0_34, %c0_35] : memref<128x128xbf16, #tpu.memory_space<vmem>>, vector<128x128xbf16>
        %cst_36 = arith.constant dense<0.000000e+00> : vector<128x128xf32>
        %58 = tpu.matmul %56, %57, %cst_36 {dimension_numbers = #tpu.dot_dimension_numbers<[1], [0], [0], [1], [0, 0, 1, 1], [], []>} : vector<128x128xbf16>, vector<128x128xbf16>, vector<128x128xf32> -> vector<128x128xf32>
        %c0_37 = arith.constant 0 : index
        %c0_38 = arith.constant 0 : index
        %59 = vector.load %arg9[%c0_37, %c0_38] : memref<1x128xf32, #tpu.memory_space<vmem>>, vector<1x128xf32>
        %60 = vector.broadcast %59 : vector<1x128xf32> to vector<128x128xf32>
        %61 = arith.addf %58, %60 : vector<128x128xf32>
        %c0_39 = arith.constant 0 : index
        %c0_40 = arith.constant 0 : index
        %62 = vector.load %arg10[%c0_39, %c0_40] : memref<128x128xf32, #tpu.memory_space<vmem>>, vector<128x128xf32>
        tpu.vector_store %arg10[%c0_39, %c0_40], %61 {strides = array<i32>} : memref<128x128xf32, #tpu.memory_space<vmem>>, vector<128x128xf32>,
      } else {
      }
    } else {
    }
    return
  }
  func.func @transform_0(%arg0: i32, %arg1: i32, %arg2: i32) -> (i32, i32) {
    %c0_i32 = arith.constant 0 : i32
    %c0_i32_0 = arith.constant 0 : i32
    return %arg2, %c0_i32 : i32, i32
  }
  func.func @transform_1(%arg0: i32, %arg1: i32, %arg2: i32) -> (i32, i32) {
    %c0_i32 = arith.constant 0 : i32
    %c0_i32_0 = arith.constant 0 : i32
    %c0_i32_1 = arith.constant 0 : i32
    return %c0_i32, %c0_i32_0 : i32, i32
  }
  func.func @transform_2(%arg0: i32, %arg1: i32, %arg2: i32) -> (i32, i32) {
    %c0_i32 = arith.constant 0 : i32
    %c0_i32_0 = arith.constant 0 : i32
    %c0_i32_1 = arith.constant 0 : i32
    return %c0_i32, %c0_i32_0 : i32, i32
  }
  func.func @transform_3(%arg0: i32, %arg1: i32, %arg2: i32) -> (i32, i32) {
    %c0_i32 = arith.constant 0 : i32
    return %arg1, %arg2 : i32, i32
  }
  func.func @transform_4(%arg0: i32, %arg1: i32, %arg2: i32) -> (i32, i32, i32) {
    %c0_i32 = arith.constant 0 : i32
    %c0_i32_0 = arith.constant 0 : i32
    %c0_i32_1 = arith.constant 0 : i32
    return %arg0, %c0_i32, %c0_i32_0 : i32, i32, i32
  }
  func.func @transform_5(%arg0: i32, %arg1: i32, %arg2: i32) -> (i32, i32) {
    %c0_i32 = arith.constant 0 : i32
    %c0_i32_0 = arith.constant 0 : i32
    %c0_i32_1 = arith.constant 0 : i32
    return %c0_i32, %c0_i32_0 : i32, i32
  }
  func.func @transform_6(%arg0: i32, %arg1: i32, %arg2: i32) -> (i32, i32) {
    %c0_i32 = arith.constant 0 : i32
    %c0_i32_0 = arith.constant 0 : i32
    %c0_i32_1 = arith.constant 0 : i32
    return %c0_i32, %c0_i32_0 : i32, i32
  }
  func.func @transform_7(%arg0: i32, %arg1: i32, %arg2: i32) -> (i32, i32) {
    %c0_i32 = arith.constant 0 : i32
    %c0_i32_0 = arith.constant 0 : i32
    return %arg1, %c0_i32 : i32, i32
  }
}

</mosaic_0001>

<bundles_post_ra>
// kernel: tpu_custom_call.1
= control target key start
LH: loop header
LB: loop body
LE: loop exit
PB: predicated region body
PF: predicated region fallthrough
CT: control target
= control target key end

     0   :  { %s3438_s0 = inlined_call_operand.hbm [shape: bf16[256,128], index: 0, kind: input, shape index: {}]   ;;  %s3439_s1 = inlined_call_operand.hbm [shape: bf16[128,128], index: 1, kind: input, shape index: {}]   ;;  %s3440_s2 = inlined_call_operand.vmem [shape: f32[1,128], index: 2, kind: input, shape index: {}]   ;;  %s3441_s3 = inlined_call_operand.hbm [shape: bf16[256,256], index: 3, kind: input, shape index: {}]   ;;  %s3442_s4 = inlined_call_operand.hbm [shape: bf16[2,128,128], index: 4, kind: input, shape index: {}]   ;;  %s3443_s5 = inlined_call_operand.hbm [shape: bf16[128,128], index: 5, kind: input, shape index: {}]   ;;  %s3444_s6 = inlined_call_operand.vmem [shape: f32[1,128], index: 6, kind: input, shape index: {}]   ;;  %s3445_s7 = inlined_call_operand.hbm [shape: f32[256,128], index: 7, kind: output, shape index: {}]  }
   0x1   :  { %3470 = sst [smem:[#allocation36_spill]] %s3438_s0 }
   0x2   :  { %3471 = sst [smem:[#allocation37_spill]] %s3440_s2 }
   0x3   :  { %3472 = sst [smem:[#allocation38_spill]] %s3441_s3 }
   0x4   :  { %3473 = sst [smem:[#allocation39_spill]] %s3442_s4 }
   0x5   :  { %3474 = sst [smem:[#allocation40_spill]] %s3443_s5 }
   0x6   :  { %3475 = sst [smem:[#allocation41_spill]] %s3444_s6 }
   0x7   :  { %3476 = sst [smem:[#allocation42_spill]] %s3445_s7 }
   0x8   :  { %12 = vsyncpa [#allocation5], 0 }
   0x9   :  { %14 = vsyncpa [#allocation5 + $0x1], 0 }
   0xa   :  { %15 = vsyncpa [#allocation8], 0 }
   0xb   :  { %16 = vsyncpa [#allocation6], 0 }
   0xc   :  { %18 = vsyncpa [#allocation6 + $0x1], 0  ;;  %s2913_s24 = smov 0   ;;  %s2915_s25 = smov 0  }
   0xd   :  { %s2917_s26 = smov 0   ;;  %s2919_s27 = smov 0  }
   0xe   :  { %s2921_s28 = smov 0   ;;  %s2923_s29 = smov 0  }
   0xf   :  { %s2925_s30 = smov 0   ;;  %s2927_s8 = smov 0  }
  0x10   :  { %s2929_s9 = smov 0   ;;  %s2931_s10 = smov 0  }
  0x11   :  { %s2933_s11 = smov 0   ;;  %s2935_s12 = smov 0  }
  0x12   :  { %s2937_s13 = smov 0   ;;  %s2939_s14 = smov 0  }
  0x13   :  { %s2941_s15 = smov 0   ;;  %s2943_s16 = smov 0  }
  0x14   :  { %s2945_s17 = smov 0   ;;  %s2947_s18 = smov 0  }
  0x15   :  { %s2949_s19 = smov 0  }
  0x16 LB: > { %3477 = sst [smem:[#allocation19_spill]] %s2795_s26  ;;  %s36_s20 = sadd.s32 1, %s2847_s16  ;;  %s2859_s19 = sphi %s2949_s19, %s24_s19   ;;  %s2855_s18 = sphi %s2947_s18, %s3573_s18   ;;  %s2851_s17 = sphi %s2945_s17, %s3560_s17   ;;  %s2847_s16 = sphi %s2943_s16, %s3572_s16   ;;  %s2843_s15 = sphi %s2941_s15, %s3571_s15   ;;  %s2839_s14 = sphi %s2939_s14, %s3556_s14   ;;  %s2835_s13 = sphi %s2937_s13, %s3570_s13   ;;  %s2831_s12 = sphi %s2935_s12, %s3555_s12   ;;  %s2827_s11 = sphi %s2933_s11, %s3569_s11   ;;  %s2823_s10 = sphi %s2931_s10, %s3568_s10   ;;  %s2819_s9 = sphi %s2929_s9, %s3567_s9   ;;  %s2815_s8 = sphi %s2927_s8, %s3566_s8   ;;  %s2811_s30 = sphi %s2925_s30, %s3565_s30   ;;  %s2807_s29 = sphi %s2923_s29, %s3564_s29   ;;  %s2803_s28 = sphi %s2921_s28, %s3563_s28   ;;  %s2799_s27 = sphi %s2919_s27, %s3551_s27   ;;  %s2795_s26 = sphi %s2917_s26, %s3550_s26   ;;  %s2791_s25 = sphi %s2915_s25, %s3561_s25   ;;  %s2787_s24 = sphi %s2913_s24, %s3559_s24  }
  0x17   : > { %3478 = sst [smem:[#allocation20_spill]] %s2799_s27  ;;  %s39_s21 = sadd.s32 1, %s2851_s17 }
  0x18   : > { %3479 = sst [smem:[#allocation21_spill]] %s2803_s28  ;;  %p37_p0 = scmp.ge.s32.totalorder %s36_s20, 2 }
  0x19   : > { %3480 = sst [smem:[#allocation22_spill]] %s2807_s29  ;;  %s50_s22 = sadd.s32 1, %s2831_s12 }
  0x1a   : > { %3481 = sst [smem:[#allocation23_spill]] %s2831_s12  ;;  %p57_p1 = scmp.ne.s32.totalorder %s2831_s12, %s2827_s11 }
  0x1b   : > { %3482 = sst [smem:[#allocation24_spill]] %s2835_s13  ;;  %p3457_p2 = scmp.eq.s32.totalorder %s2859_s19, 0 }
  0x1c   : > { %3483 = sst [smem:[#allocation25_spill]] %s2839_s14  ;;  %s3575_s20 = smov (%p37_p0, %s36_s20), 0 }
  0x1d   : > { %3484 = sst [smem:[#allocation26_spill]] %s2843_s15  ;;  %s3577_s21 = smov (!%p37_p0, %s39_s21), %s2851_s17 }
  0x1e   : > { %3485 = sst [smem:[#allocation27_spill]] %s2851_s17  ;;  %s47_s23 = ssub.s32 %s2847_s16, %s3575_s20 }
  0x1f   : > { %3486 = sst [smem:[#allocation28_spill]] %s2855_s18  ;;  %p3023_p3 = por %p3457_p2, %p57_p1 }
  0x20   : > { %3487 = sst [smem:[#allocation29_spill]] %s3575_s20  ;;  %p3455_p4 = scmp.ge.s32.totalorder %s3577_s21, 2 }
  0x21   : > { %3488 = sst [smem:[#allocation30_spill]] %s3577_s21  ;;  %p48_p5 = scmp.eq.s32.totalorder %s47_s23, 0 }
  0x22   : > { %p63_p6 = scmp.ne.s32.totalorder %s2827_s11, %s2823_s10  ;;  %s214_s6 = sadd.s32 1, %s2795_s26 }
  0x23   : > { %s3034_s2 = scalar_select %p3455_p4, 0, %s3577_s21  }
  0x24   : > { %s3037_s13 = scalar_select %p48_p5, %s2831_s12, %s50_s22  }
  0x25   : > { %3490 = sst [smem:[#allocation31_spill]] %s3034_s2  ;;  %s115_s14 = ssub.s32 %s2851_s17, %s3034_s2 }
  0x26   : > { %3491 = sst [smem:[#allocation32_spill]] %s3037_s13  ;;  %s117_s20 = sor.u32 %s115_s14, %s47_s23 }
  0x27   : > { %p212_p7 = scmp.eq.s32.totalorder %s115_s14, 0  ;;  %p3041_p8 = scmp.eq.s32.totalorder %s117_s20, 0 }
  0x28   : > { %p3456_p9 = scmp.lt.s32.totalorder %s2859_s19, 8  ;;  %s283_s27 = sand.u32 1, %s2859_s19  }
  0x29   : > { %s3046_s4 = scalar_select %p212_p7, %s2795_s26, %s214_s6  }
  0x2a   : > { %s285_s28 = sand.u32 1, %s2831_s12   ;;  %s1853_s21 = sshll.u32 %s2847_s16, 10 }
  0x2b   : > { %3493 = sst [smem:[#allocation33_spill]] %s3046_s4  ;;  %s1732_s29 = sshll.u32 %s285_s28, 6 }
  0x2c   : > { %s3494_s0 = sld [smem:[#allocation36_spill]]  ;;  %s287_s22 = scalar_lea.vmem [#allocation4], %s1732_s29 }
  0x2d   : > { %s294_s13 = sshll.u32 %s287_s22, 4  ;;  %p3059_p10 = pnand %p3456_p9, %p3023_p3  ;;  %s295_s13 = int_to_ptr.vmem [resolvable:$true] %s294_s13 }
  0x2e   : > { %s3063_s6 = scalar_lea.sflag [#allocation5], %s283_s27  ;;  %s2536_s28 = scalar_lea.vmem %s295_s13, 1024 }
  0x2f   : > { %p2525_p11 = pneg %p3059_p10  ;;  %p2537_p12 = scmp.ne.s32.totalorder %s295_s13, %s2536_s28 }
  0x30   : > { %s2861_s5 = smov [#allocation4]  }
  0x31   : > { %p2539_p13 = pnand %p2537_p12, %p2525_p11  ;;  %s2541_s18 = sshll.u32 %s2861_s5, 4  ;;  %s2542_s18 = int_to_ptr.vmem [resolvable:$false] %s2541_s18 }
  0x32   : > { %s293_s3 = scalar_lea.hbm %s3494_s0, %s1853_s21  ;;  %s2543_s29 = scalar_lea.vmem %s2542_s18, 2048 }
  0x33   : > { %p2540_p0 = pneg %p2539_p13  ;;  %p2544_p1 = scmp.lt.s32.totalorder %s295_s13, %s2542_s18 }
  0x34   : > { %p2545_p5 = scmp.lt.s32.totalorder %s2543_s29, %s2536_s28 }
  0x36   : > { %p2546_p7 = por %p2545_p5, %p2544_p1 }
  0x38   : > { %p2547_p3 = pnand %p2546_p7, %p2540_p0 }
  0x3a   : > { %2550 = shalt.err (!%p2547_p3)
}
  0x3b   : > { %s3468_s7 = smov 64   ;;  %s3469_s27 = smov 4  }
  0x3c   : > { %2266 = dma.hbm_to_vmem [thread:$0]  (!%p3059_p10), %s293_s3, 1024, %s295_s13, %s3063_s6, %s3468_s7, %s3468_s7, %s3469_s27  }
  0x3d   : > { %s3074_s20 = sadd.s32 4294967295, %s2859_s19   ;;  %s1727_s21 = sadd.s32 4294967294, %s2859_s19  }
  0x3e   : > { %p3458_p11 = scmp.eq.s32.totalorder %s3074_s20, 0  ;;  %p133_p12 = scmp.ne.s32.totalorder %s2815_s8, %s2811_s30 }
  0x3f   : > { %p224_p13 = scmp.ne.s32.totalorder %s2795_s26, %s2791_s25  ;;  %p225_p10 = scmp.eq.s32.totalorder %s3074_s20, 7 }
  0x40   : > { %p3087_p0 = por %p3458_p11, %p63_p6  ;;  %p3094_p1 = por %p133_p12, %p3458_p11 }
  0x41   : > { %p230_p5 = scmp.ne.s32.totalorder %s2791_s25, %s2787_s24  ;;  %p3100_p7 = por %p225_p10, %p224_p13 }
  0x42   : > { %s3496_s23 = scalar_select %p3087_p0, 1, 0 }
  0x43   : > { %s3497_s3 = scalar_select %p3094_p1, 1, 0 }
  0x44   : > { %s3498_s30 = scalar_select %p3100_p7, 1, 0 }
  0x45   : > { %p231_p6 = scmp.eq.s32.totalorder %s1727_s21, 7  ;;  %p1728_p3 = scmp.ge.s32.totalorder %s2859_s19, 1 }
  0x46   : > { %p238_p4 = scmp.lt.s32.totalorder %s2859_s19, 9  ;;  %s2864_s22 = smov [#allocation7]  }
  0x47   : > { %p3106_p9 = por %p231_p6, %p230_p5  ;;  %s250_s14 = sshll.u32 %s2864_s22, 4  ;;  %s251_s14 = int_to_ptr.vmem [resolvable:$true] %s250_s14 }
  0x48   : > { %p3110_p2 = pnand %p1728_p3, %p238_p4  ;;  %s1854_s28 = sshll.u32 %s2851_s17, 5 }
  0x49   : > { %s3499_s10 = scalar_select %p3106_p9, 1, 0 }
  0x4a   : > { %p2256_p12 = pneg %p3110_p2  ;;  %s120_s18 = sadd.s32 1, %s2819_s9 }
  0x4b   : > { %3500 = sst [smem:[#allocation34_spill]] %s3499_s10  ;;  %p127_p4 = scmp.ne.s32.totalorder %s2819_s9, %s2815_s8 }
  0x4c   : > { %p3119_p13 = pnand %p2256_p12, %p3458_p11  ;;  %s2562_s21 = scalar_lea.vmem %s251_s14, 1024 }
  0x4d   : > { %s3127_s29 = scalar_select %p3041_p8, %s2819_s9, %s120_s18  }
  0x4e   : > { %p3465_p10 = pneg %p3119_p13  ;;  %p2563_p5 = scmp.ne.s32.totalorder %s251_s14, %s2562_s21 }
  0x4f   : > { %3503 = sst [smem:[#allocation35_spill]] %s3127_s29  ;;  %p2570_p9 = scmp.lt.s32.totalorder %s251_s14, %s251_s14 }
  0x50   : > { %p2565_p6 = pnand %p2563_p5, %p3465_p10  ;;  %p2571_p12 = scmp.lt.s32.totalorder %s2562_s21, %s2562_s21 }
  0x52   : > { %p2566_p3 = pneg %p2565_p6  ;;  %p2572_p11 = por %p2571_p12, %p2570_p9 }
  0x54   : > { %p2573_p7 = pnand %p2572_p11, %p2566_p3 }
  0x56   : > { %2576 = shalt.err (!%p2573_p7)
}
  0x57   : > { %2259 = dma.hbm_to_vmem [thread:$0]  (!%p3119_p13), %s3439_s1, 1024, %s251_s14, [#allocation8], %s3468_s7, %s3468_s7, %s3469_s27  }
  0x58   : > { %p3504_p8 = scmp.eq.s32.totalorder %s2859_s19, 0  ;;  %s306_s18 = sand.u32 1, %s2819_s9  }
  0x59   : > { %s1735_s21 = sshll.u32 %s306_s18, 6  ;;  %s314_s0 = sadd.s32 %s2847_s16, %s1854_s28 }
  0x5a   : > { %p129_p5 = por %p127_p4, %p3504_p8  ;;  %s1738_s2 = sshll.u32 %s314_s0, 6 }
  0x5b   : > { %s3505_s29 = sld [smem:[#allocation38_spill]]  ;;  %s308_s26 = scalar_lea.vmem [#allocation9], %s1735_s21 }
  0x5c   : > { %s317_s10 = sshll.u32 %s308_s26, 4  ;;  %p3506_p9 = scmp.lt.s32.totalorder %s2859_s19, 8  ;;  %s318_s10 = int_to_ptr.vmem [resolvable:$true] %s317_s10 }
  0x5d   : > { %s2865_s14 = smov [#allocation11]   ;;  %s2590_s18 = scalar_lea.vmem %s318_s10, 1024 }
  0x5e   : > { %p3153_p11 = pnand %p3506_p9, %p129_p5  ;;  %s266_s22 = sshll.u32 %s2865_s14, 4  ;;  %s267_s22 = int_to_ptr.vmem [resolvable:$true] %s266_s22 }
  0x5f   : > { %p2591_p4 = scmp.ne.s32.totalorder %s318_s10, %s2590_s18  ;;  %s2866_s0 = smov [#allocation9]  }
  0x60   : > { %p2579_p7 = pneg %p3153_p11  ;;  %s2595_s12 = sshll.u32 %s2866_s0, 4  ;;  %s2596_s12 = int_to_ptr.vmem [resolvable:$false] %s2595_s12 }
  0x61   : > { %s316_s4 = scalar_lea.hbm %s3505_s29, %s1738_s2  ;;  %s2597_s2 = scalar_lea.vmem %s2596_s12, 2048 }
  0x62   : > { %p2593_p6 = pnand %p2591_p4, %p2579_p7  ;;  %p2598_p12 = scmp.lt.s32.totalorder %s318_s10, %s2596_s12 }
  0x63   : > { %p2599_p8 = scmp.lt.s32.totalorder %s2597_s2, %s2590_s18 }
  0x64   : > { %p2594_p3 = pneg %p2593_p6 }
  0x65   : > { %p2600_p10 = por %p2599_p8, %p2598_p12 }
  0x67   : > { %p2601_p5 = pnand %p2600_p10, %p2594_p3 }
  0x69   : > { %2604 = shalt.err (!%p2601_p5)
}
  0x6a   : > { %s2867_s26 = smov 128   ;;  %s2616_s17 = scalar_lea.vmem %s267_s22, 1024 }
  0x6b   : > { %2269 = dma.hbm_to_vmem [thread:$0]  (!%p3153_p11), %s316_s4, 1024, %s318_s10, %s3063_s6, %s2867_s26, %s3468_s7, %s3469_s27  }
  0x6c   : > { %p2617_p9 = scmp.ne.s32.totalorder %s267_s22, %s2616_s17  ;;  %p3508_p7 = pneg %p3119_p13 }
  0x6d   : > { %p2624_p1 = scmp.lt.s32.totalorder %s267_s22, %s267_s22  ;;  %p2625_p0 = scmp.lt.s32.totalorder %s2616_s17, %s2616_s17 }
  0x6e   : > { %p2619_p4 = pnand %p2617_p9, %p3508_p7 }
  0x6f   : > { %p2626_p12 = por %p2625_p0, %p2624_p1 }
  0x70   : > { %p2620_p6 = pneg %p2619_p4 }
  0x72   : > { %p2627_p10 = pnand %p2626_p12, %p2620_p6 }
  0x74   : > { %2630 = shalt.err (!%p2627_p10)
}
  0x75   : > { %s3509_s4 = sld [smem:[#allocation40_spill]]  ;;  %p3516_p8 = scmp.eq.s32.totalorder %s2859_s19, 0 }
  0x76   : > { %s3510_s10 = sld [smem:[#allocation28_spill]]  ;;  %p3518_p9 = scmp.eq.s32.totalorder %s3074_s20, 0 }
  0x77   : > { %s3511_s21 = sld [smem:[#allocation30_spill]]  ;;  %p3521_p4 = scmp.lt.s32.totalorder %s2859_s19, 8 }
  0x78   : > { %s3512_s15 = sld [smem:[#allocation22_spill]] }
  0x79   : > { %s3513_s14 = sld [smem:[#allocation21_spill]] }
  0x7a   : > { %s3514_s18 = sld [smem:[#allocation20_spill]] }
  0x7b   : > { %2262 = dma.hbm_to_vmem [thread:$0]  (!%p3119_p13), %s3509_s4, 1024, %s267_s22, [#allocation8], %s3468_s7, %s3468_s7, %s3469_s27  }
  0x7c   : > { %s43_s5 = sadd.s32 1, %s3510_s10  ;;  %s1855_s28 = sshll.u32 %s3510_s10, 10 }
  0x7d   : > { %p3515_p0 = scmp.ge.s32.totalorder %s3511_s21, 2  ;;  %s3520_s21 = sld [smem:[#allocation39_spill]] }
  0x7e   : > { %s146_s0 = sadd.s32 1, %s3512_s15  ;;  %s329_s2 = sand.u32 1, %s3512_s15  }
  0x7f   : > { %s3579_s5 = smov (!%p3515_p0, %s43_s5), %s3510_s10  ;;  %p153_p1 = scmp.ne.s32.totalorder %s3512_s15, %s3513_s14 }
  0x80   : > { %p45_p11 = scmp.ge.s32.totalorder %s3579_s5, 2  ;;  %p159_p3 = scmp.ne.s32.totalorder %s3513_s14, %s3514_s18 }
  0x81   : > { %p3186_p5 = por %p153_p1, %p3516_p8  ;;  %s1739_s26 = sshll.u32 %s329_s2, 6 }
  0x82   : > { %s3581_s5 = smov (%p45_p11, %s3579_s5), 0  ;;  %p3195_p13 = por %p159_p3, %p3518_p9 }
  0x83   : > { %s143_s17 = ssub.s32 %s3510_s10, %s3581_s5  ;;  %s337_s14 = scalar_lea.hbm %s3520_s21, %s1855_s28 }
  0x84   : > { %p144_p7 = scmp.eq.s32.totalorder %s143_s17, 0  ;;  %s331_s18 = scalar_lea.vmem [#allocation10], %s1739_s26 }
  0x85   : > { %s338_s7 = sshll.u32 %s331_s18, 4  ;;  %p3212_p6 = pnand %p3521_p4, %p3186_p5  ;;  %s339_s7 = int_to_ptr.vmem [resolvable:$true] %s338_s7 }
  0x86   : > { %s3583_s15 = smov (!%p144_p7, %s3512_s15), %s146_s0  ;;  %s2644_s2 = scalar_lea.vmem %s339_s7, 1024 }
  0x87   : > { %p2633_p12 = pneg %p3212_p6  ;;  %p2645_p10 = scmp.ne.s32.totalorder %s339_s7, %s2644_s2 }
  0x88   : > { %s2868_s10 = smov [#allocation10]  }
  0x89   : > { %p2647_p0 = pnand %p2645_p10, %p2633_p12  ;;  %s2649_s17 = sshll.u32 %s2868_s10, 4  ;;  %s2650_s17 = int_to_ptr.vmem [resolvable:$false] %s2649_s17 }
  0x8a   : > { %s2651_s26 = scalar_lea.vmem %s2650_s17, 2048  ;;  %p2652_p11 = scmp.lt.s32.totalorder %s339_s7, %s2650_s17 }
  0x8b   : > { %p2648_p1 = pneg %p2647_p0  ;;  %p2653_p3 = scmp.lt.s32.totalorder %s2651_s26, %s2644_s2 }
  0x8d   : > { %p2654_p8 = por %p2653_p3, %p2652_p11 }
  0x8f   : > { %p2655_p9 = pnand %p2654_p8, %p2648_p1 }
  0x91   : > { %2658 = shalt.err (!%p2655_p9)
}
  0x92   : > { %s3523_s0 = smov 4   ;;  %s3524_s12 = smov 64  }
  0x93   : > { %2272 = dma.hbm_to_vmem [thread:$0]  (!%p3212_p6), %s337_s14, 1024, %s339_s7, %s3063_s6, %s3524_s12, %s3524_s12, %s3523_s0  }
  0x94   : > { %350 = sbr.rel (%p3110_p2) target bundleno = 1246 (0x4de), region = 48  ;;  %s352_s28 = sand.u32 (!%p3110_p2), 1, %s3074_s20  }
  0x95   : > { %s354_s29 = sand.u32 (!%p3110_p2), 1, %s2827_s11   ;;  %s353_s21 = scalar_lea.sflag (!%p3110_p2), [#allocation5], %s352_s28 }
  0x96   : > { %s1743_s4 = sshll.u32 (!%p3110_p2), %s354_s29, 6  ;;  %p3525_p5 = scmp.ne.s32.totalorder (!%p3110_p2), %s3496_s23, 0 }
  0x97   : > { %s3228_s18 = scalar_lea.vmem (!%p3110_p2), [#allocation4], %s1743_s4 }
  0x99   : > { %2762 = dma.done.wait (%p3525_p5), %s353_s21, 1024  }
  0x9a   : > { %2764 = vsyncadd (%p3525_p5), %s353_s21, 4294966272  ;;  %p3526_p7 = scmp.eq.s32.totalorder %s3074_s20, 0 }
  0x9c   : > { %2766 = dma.done.wait (%p3526_p7), [#allocation8], 1024   ;;  %p3527_p4 = pmov %p3526_p7 }
  0x9d   : > { %s367_s6 = sand.u32 1, %s2815_s8   ;;  %p3528_p2 = scmp.ne.s32.totalorder %s3497_s3, 0 }
  0x9e   : > { %2768 = vsyncadd (%p3527_p4), [#allocation8], 4294966272  ;;  %s1745_s7 = sshll.u32 %s367_s6, 6 }
  0x9f   : > { %s3239_s27 = scalar_lea.vmem [#allocation9], %s1745_s7 }
  0xa0   : > { %2770 = dma.done.wait (%p3528_p2), %s353_s21, 1024  }
  0xa1   : > { %2772 = vsyncadd (%p3528_p2), %s353_s21, 4294966272  ;;  %s3529_s13 = sld [smem:[#allocation21_spill]] }
  0xa7   : > { %s376_s23 = sand.u32 1, %s3529_s13  }
  0xa8   : > { %s1746_s14 = sshll.u32 %s376_s23, 6 }
  0xa9   : > { %s3246_s2 = scalar_lea.vmem [#allocation10], %s1746_s14 }
  0xaa   : > { %2774 = dma.done.wait (%p3195_p13), %s353_s21, 1024  }
  0xab   : > { %2776 = vsyncadd (%p3195_p13), %s353_s21, 4294966272  ;;  %p3530_p6 = pmov %p3527_p4 }
  0xac   : > { %p3531_p12 = pmov %p3527_p4 }
  0xad   : > { %2778 = dma.done.wait (%p3530_p6), [#allocation8], 1024  }
  0xae   : > { %2780 = vsyncadd (%p3531_p12), [#allocation8], 4294966272  ;;  %s3532_s3 = sld [smem:[#allocation26_spill]]  ;;  %s420_s17 = sand.u32 1, %s2791_s25  }
  0xaf   : > { %s3533_s10 = sld [smem:[#allocation25_spill]]  ;;  %s1748_s26 = sshll.u32 %s420_s17, 7 }
  0xb0   : > { %s3261_s0 = scalar_lea.vmem [#allocation12], %s1748_s26 }
  0xb4   : > { %p427_p10 = scmp.eq.s32.totalorder %s3532_s3, 0 }
  0xb5   : > { %p428_p0 = scmp.eq.s32.totalorder %s3533_s10, 0 }
  0xb7   : > { %p429_p1 = pnand %p428_p0, %p427_p10 }
  0xb8   : > { %s3534_s20 = sld [smem:[#allocation24_spill]] (!%p429_p1) }
  0xb9   : > { %432 = sbr.rel (%p429_p1) target bundleno = 435 (0x1b3), region = 72  ;;  %s3535_s28 = sld [smem:[#allocation37_spill]] (!%p429_p1) }
  0xbe   : > { %v2443_v0 = vld [vmem:[#allocation7 + $0x38] sm:$0xff]   ;;  %v2444_v1 = vld [vmem:[#allocation7 + $0x30] sm:$0xff]   ;;  %v2445_v2 = vld [vmem:[#allocation7 + $0x28] sm:$0xff]   ;;  %s1872_s29 = sshll.u32 %s3534_s20, 6 }
  0xbf   : > { %2048 = vmatprep.subr.bf16.mxu0 %v2443_v0  ;;  %2176 = vmatprep.subr.bf16.mxu1 %v2443_v0  ;;  %v2446_v3 = vld [vmem:[#allocation7 + $0x20] sm:$0xff]   ;;  %v2447_v6 = vld [vmem:[#allocation7 + $0x18] sm:$0xff]   ;;  %v2448_v7 = vld [vmem:[#allocation7 + $0x10] sm:$0xff]   ;;  %s731_s4 = scalar_lea.vmem [#allocation2], %s1872_s29 }
  0xc0   : > { %2049 = vmatpush3.bf16.msra.mxu0 %v2443_v0  ;;  %2184 = vmatpush3.bf16.msra.mxu1 %v2443_v0  ;;  %v2451_v4 = vld [vmem:[%s3228_s18] sm:$0xff]   ;;  %v2449_v8 = vld [vmem:[#allocation7 + $0x8] sm:$0xff]   ;;  %v2455_v12 = vld [vmem:[%s3228_s18 + $0x10] sm:$0xff]  }
  0xc1   : > { %2050 = vmatprep.subr.bf16.mxu0 %v2444_v1  ;;  %2177 = vmatprep.subr.bf16.mxu1 %v2444_v1  ;;  %v2452_v5 = vld [vmem:[%s3228_s18 + $0x20] sm:$0xff]   ;;  %v2453_v10 = vld [vmem:[%s3228_s18 + $0x8] sm:$0xff]   ;;  %v2456_v13 = vld [vmem:[%s3228_s18 + $0x30] sm:$0xff]  }
  0xc2   : > { %2064 = vmatprep.mubr.bf16.mxu0 %v2451_v4  ;;  %2072 = vmatprep.mubr.bf16.mxu1 %v2452_v5  ;;  %v2450_v9 = vld [vmem:[#allocation7] sm:$0xff]   ;;  %v2454_v11 = vld [vmem:[%s3228_s18 + $0x28] sm:$0xff]   ;;  %v2457_v14 = vld [vmem:[%s3228_s18 + $0x18] sm:$0xff]  }
  0xc3   : > { %v2458_v15 = vld [vmem:[%s3228_s18 + $0x38] sm:$0xff]   ;;  %v1749_v18 = vld [vmem:[%s3535_s28] ss:$0 sm:$0xff] }
  0xc4   : > { %2051 = vmatpush3.bf16.msra.mxu0 %v2444_v1  ;;  %2185 = vmatpush3.bf16.msra.mxu1 %v2444_v1 }
  0xc5   : > { %2052 = vmatprep.subr.bf16.mxu0 %v2445_v2  ;;  %2178 = vmatprep.subr.bf16.mxu1 %v2445_v2 }
  0xc8   : > { %2053 = vmatpush3.bf16.msra.mxu0 %v2445_v2  ;;  %2186 = vmatpush3.bf16.msra.mxu1 %v2445_v2 }
  0xc9   : > { %2054 = vmatprep.subr.bf16.mxu0 %v2446_v3  ;;  %2179 = vmatprep.subr.bf16.mxu1 %v2446_v3 }
  0xcc   : > { %2055 = vmatpush3.bf16.msra.mxu0 %v2446_v3  ;;  %2187 = vmatpush3.bf16.msra.mxu1 %v2446_v3 }
  0xcd   : > { %2056 = vmatprep.subr.bf16.mxu0 %v2447_v6  ;;  %2180 = vmatprep.subr.bf16.mxu1 %v2447_v6 }
  0xd0   : > { %2057 = vmatpush3.bf16.msra.mxu0 %v2447_v6  ;;  %2188 = vmatpush3.bf16.msra.mxu1 %v2447_v6 }
  0xd1   : > { %2058 = vmatprep.subr.bf16.mxu0 %v2448_v7  ;;  %2181 = vmatprep.subr.bf16.mxu1 %v2448_v7 }
  0xd4   : > { %2059 = vmatpush3.bf16.msra.mxu0 %v2448_v7  ;;  %2189 = vmatpush3.bf16.msra.mxu1 %v2448_v7 }
  0xd5   : > { %2060 = vmatprep.subr.bf16.mxu0 %v2449_v8  ;;  %2182 = vmatprep.subr.bf16.mxu1 %v2449_v8 }
  0xd8   : > { %2061 = vmatpush3.bf16.msra.mxu0 %v2449_v8  ;;  %2190 = vmatpush3.bf16.msra.mxu1 %v2449_v8 }
  0xd9   : > { %2062 = vmatprep.subr.bf16.mxu0 %v2450_v9  ;;  %2183 = vmatprep.subr.bf16.mxu1 %v2450_v9 }
  0xdc   : > { %2063 = vmatpush3.bf16.msra.mxu0 %v2450_v9  ;;  %2191 = vmatpush3.bf16.msra.mxu1 %v2450_v9 }
  0xdf   : > { %2065 = vmatmul.mubr.bf16.vlgmr.msra.gmra.mxu0 %v2453_v10  ;;  %2073 = vmatmul.mubr.bf16.vlgmr.msra.gmra.mxu1 %v2454_v11 }
  0xe0   : > { %2068 = vmatprep.mubr.bf16.mxu0 %v2455_v12  ;;  %2076 = vmatprep.mubr.bf16.mxu1 %v2456_v13 }
  0xe7   : > { %2069 = vmatmul.mubr.bf16.gmra.mxu0 %v2457_v14  ;;  %2077 = vmatmul.mubr.bf16.gmra.mxu1 %v2458_v15 }
 0x19f   : > { %v2066_v16 = vpop.f32.mrf.mxu0  ;;  %v2074_v17 = vpop.f32.mrf.mxu1 }
 0x1a0   : > { %v611_v23 = vadd.f32 %v2066_v16, %v1749_v18  ;;  %v643_v24 = vadd.f32 %v2074_v17, %v1749_v18 }
 0x1a1   : > { %v602_v19 = vpop.f32.mrf.mxu0  ;;  %v634_v20 = vpop.f32.mrf.mxu1 }
 0x1a2   : > { %v603_v27 = vadd.f32 %v1749_v18, %v602_v19  ;;  %v635_v28 = vadd.f32 %v1749_v18, %v634_v20 }
 0x1a3   : > { %v2067_v21 = vpop.f32.mrf.mxu0  ;;  %v2075_v22 = vpop.f32.mrf.mxu1 }
 0x1a4   : > { %v614_v25 = vadd.f32 %v2067_v21, %v1749_v18  ;;  %v646_v26 = vadd.f32 %v2075_v22, %v1749_v18 }
 0x1a5   : > { %v605_v29 = vpop.f32.mrf.mxu0  ;;  %v637_v30 = vpop.f32.mrf.mxu1 }
 0x1a6   : > { %v1898_v31 = vpack.c.bf16 %v614_v25, %v611_v23  ;;  %v1918_v32 = vpack.c.bf16 %v646_v26, %v643_v24  ;;  %v606_v33 = vadd.f32 %v1749_v18, %v605_v29  ;;  %v638_v34 = vadd.f32 %v1749_v18, %v637_v30 }
 0x1a7   : > { %v2070_v35 = vpop.f32.mrf.mxu0  ;;  %v2078_v36 = vpop.f32.mrf.mxu1 }
 0x1a8   : > { %1970 = vst [vmem:[%s731_s4 + $0x8] sm:$0xff] %v1898_v31   ;;  %1974 = vst [vmem:[%s731_s4 + $0x28] sm:$0xff] %v1918_v32   ;;  %v1893_v37 = vpack.c.bf16 %v606_v33, %v603_v27  ;;  %v1913_v38 = vpack.c.bf16 %v638_v34, %v635_v28  ;;  %v627_v43 = vadd.f32 %v2070_v35, %v1749_v18 }
 0x1a9   : > { %v618_v39 = vpop.f32.mrf.mxu0  ;;  %v650_v40 = vpop.f32.mrf.mxu1  ;;  %v659_v44 = vadd.f32 %v2078_v36, %v1749_v18 }
 0x1aa   : > { %1894 = vst [vmem:[%s731_s4] sm:$0xff] %v1893_v37   ;;  %1973 = vst [vmem:[%s731_s4 + $0x20] sm:$0xff] %v1913_v38   ;;  %v619_v47 = vadd.f32 %v1749_v18, %v618_v39  ;;  %v651_v48 = vadd.f32 %v1749_v18, %v650_v40 }
 0x1ab   : > { %v2071_v41 = vpop.f32.mrf.mxu0  ;;  %v2079_v42 = vpop.f32.mrf.mxu1 }
 0x1ac   : > { %v630_v45 = vadd.f32 %v2071_v41, %v1749_v18  ;;  %v662_v46 = vadd.f32 %v2079_v42, %v1749_v18 }
 0x1ad   : > { %v621_v49 = vpop.f32.mrf.mxu0  ;;  %v653_v50 = vpop.f32.mrf.mxu1 }
 0x1ae   : > { %v1908_v51 = vpack.c.bf16 %v630_v45, %v627_v43  ;;  %v1928_v52 = vpack.c.bf16 %v662_v46, %v659_v44  ;;  %v622_v53 = vadd.f32 %v1749_v18, %v621_v49  ;;  %v654_v54 = vadd.f32 %v1749_v18, %v653_v50 }
 0x1b0   : > { %1972 = vst [vmem:[%s731_s4 + $0x18] sm:$0xff] %v1908_v51   ;;  %1976 = vst [vmem:[%s731_s4 + $0x38] sm:$0xff] %v1928_v52   ;;  %v1903_v55 = vpack.c.bf16 %v622_v53, %v619_v47  ;;  %v1923_v56 = vpack.c.bf16 %v654_v54, %v651_v48 }
 0x1b2   : > { %1971 = vst [vmem:[%s731_s4 + $0x10] sm:$0xff] %v1903_v55   ;;  %1975 = vst [vmem:[%s731_s4 + $0x30] sm:$0xff] %v1923_v56  }
 0x1b3 PF: > { %s3536_s21 = sld [smem:[#allocation24_spill]] }
 0x1b9   : > { %p1784_p13 = scmp.ne.s32.totalorder %s3536_s21, 0 }
 0x1bb   : > { %751 = sbr.rel (%p1784_p13) target bundleno = 457 (0x1c9), region = 76 }
 0x1c0   : > { %v2869_v57 = vmov 0.0  }
 0x1c1   : > { %752 = vst [vmem:[#allocation3 + $0x30] sm:$0xff] %v2869_v57  ;;  %753 = vst [vmem:[#allocation3] sm:$0xff] %v2869_v57 }
 0x1c2   : > { %754 = vst [vmem:[#allocation3 + $0x58] sm:$0xff] %v2869_v57  ;;  %755 = vst [vmem:[#allocation3 + $0x18] sm:$0xff] %v2869_v57 }
 0x1c3   : > { %756 = vst [vmem:[#allocation3 + $0x50] sm:$0xff] %v2869_v57  ;;  %757 = vst [vmem:[#allocation3 + $0x68] sm:$0xff] %v2869_v57 }
 0x1c4   : > { %758 = vst [vmem:[#allocation3 + $0x8] sm:$0xff] %v2869_v57  ;;  %759 = vst [vmem:[#allocation3 + $0x48] sm:$0xff] %v2869_v57 }
 0x1c5   : > { %760 = vst [vmem:[#allocation3 + $0x40] sm:$0xff] %v2869_v57  ;;  %761 = vst [vmem:[#allocation3 + $0x20] sm:$0xff] %v2869_v57 }
 0x1c6   : > { %762 = vst [vmem:[#allocation3 + $0x10] sm:$0xff] %v2869_v57  ;;  %763 = vst [vmem:[#allocation3 + $0x38] sm:$0xff] %v2869_v57 }
 0x1c7   : > { %764 = vst [vmem:[#allocation3 + $0x60] sm:$0xff] %v2869_v57  ;;  %765 = vst [vmem:[#allocation3 + $0x70] sm:$0xff] %v2869_v57 }
 0x1c8   : > { %766 = vst [vmem:[#allocation3 + $0x78] sm:$0xff] %v2869_v57  ;;  %767 = vst [vmem:[#allocation3 + $0x28] sm:$0xff] %v2869_v57 }
 0x1c9 PF: > { %s3537_s18 = sld [smem:[#allocation26_spill]]  ;;  %v2467_v58 = vld [vmem:[%s3239_s27] sm:$0xff]   ;;  %v2469_v4 = vld [vmem:[%s3239_s27 + $0x8] sm:$0xff]   ;;  %v2471_v6 = vld [vmem:[%s3239_s27 + $0x10] sm:$0xff]  }
 0x1ca   : > { %s3538_s6 = sld [smem:[#allocation24_spill]]  ;;  %v2468_v59 = vld [vmem:[%s3239_s27 + $0x20] sm:$0xff]   ;;  %2096 = vmatprep.mubr.bf16.mxu0 %v2467_v58  ;;  %v2470_v5 = vld [vmem:[%s3239_s27 + $0x28] sm:$0xff]   ;;  %v2472_v7 = vld [vmem:[%s3239_s27 + $0x30] sm:$0xff]  }
 0x1cb   : > { %2104 = vmatprep.mubr.bf16.mxu1 %v2468_v59  ;;  %v2473_v8 = vld [vmem:[%s3239_s27 + $0x18] sm:$0xff]   ;;  %v780_v14 = vld [vmem:[#allocation3 + $0x30] sm:$0xff]  ;;  %v781_v26 = vld [vmem:[#allocation3] sm:$0xff] }
 0x1cc   : > { %v2474_v9 = vld [vmem:[%s3239_s27 + $0x38] sm:$0xff]   ;;  %v788_v15 = vld [vmem:[#allocation3 + $0x40] sm:$0xff]  ;;  %v786_v32 = vld [vmem:[#allocation3 + $0x8] sm:$0xff] }
 0x1cd   : > { %v782_v10 = vld [vmem:[#allocation3 + $0x58] sm:$0xff]  ;;  %v790_v11 = vld [vmem:[#allocation3 + $0x10] sm:$0xff]  ;;  %v789_v27 = vld [vmem:[#allocation3 + $0x20] sm:$0xff] }
 0x1ce   : > { %v783_v20 = vld [vmem:[#allocation3 + $0x18] sm:$0xff]  ;;  %v784_v38 = vld [vmem:[#allocation3 + $0x50] sm:$0xff]  ;;  %v792_v39 = vld [vmem:[#allocation3 + $0x60] sm:$0xff] }
 0x1cf   : > { %p768_p11 = scmp.lt.s32.totalorder %s3537_s18, 0  ;;  %s769_s7 = ssub.s32 0, %s3537_s18  ;;  %v791_v21 = vld [vmem:[#allocation3 + $0x38] sm:$0xff]  ;;  %v787_v44 = vld [vmem:[#allocation3 + $0x48] sm:$0xff]  ;;  %v793_v51 = vld [vmem:[#allocation3 + $0x70] sm:$0xff] }
 0x1d0   : > { %s1785_s13 = smin.u32 %s3537_s18, %s769_s7  ;;  %s1788_s3 = sshll.u32 %s3538_s6, 4  ;;  %v794_v33 = vld [vmem:[#allocation3 + $0x78] sm:$0xff]  ;;  %v795_v45 = vld [vmem:[#allocation3 + $0x28] sm:$0xff] }
 0x1d1   : > { %s771_s23 = sand.u32 1, %s1785_s13   ;;  %v785_v50 = vld [vmem:[#allocation3 + $0x68] sm:$0xff]  ;;  %p1807_p8 = scmp.ne.s32.totalorder %s3538_s6, 1 }
 0x1d2   : > { %s772_s14 = ssub.s32 0, %s771_s23  ;;  %s3539_s27 = sld [smem:[#allocation26_spill]] (!%p1807_p8) }
 0x1d3   : > { %s3585_s14 = smov (!%p768_p11, %s772_s14), %s771_s23  ;;  %s3540_s18 = sld [smem:[#allocation25_spill]] (!%p1807_p8) }
 0x1d4   : > { %p1787_p3 = scmp.lt.s32.totalorder %s3585_s14, 0  ;;  %s778_s10 = sadd.s32 2, %s3585_s14 }
 0x1d6   : > { %s3587_s10 = smov (!%p1787_p3, %s778_s10), %s3585_s14 }
 0x1d7   : > { %s1789_s26 = sshll.u32 %s3587_s10, 5 }
 0x1d8   : > { %s814_s20 = sadd.s32 %s1789_s26, %s1788_s3  ;;  %p1838_p7 = scmp.ne.s32.totalorder (!%p1807_p8), %s3539_s27, 1 }
 0x1d9   : > { %s1790_s22 = sshll.u32 %s814_s20, 2  ;;  %s1835_s7 = sshll.u32 (!%p1807_p8), %s3540_s18, 4 }
 0x1da   : > { %s3282_s12 = scalar_lea.vmem [#allocation2], %s1790_s22 }
 0x1db   : > { %v2459_v60 = vld [vmem:[%s3282_s12 + $0x38] sm:$0xff]   ;;  %v2460_v61 = vld [vmem:[%s3282_s12 + $0x30] sm:$0xff]   ;;  %v2461_v62 = vld [vmem:[%s3282_s12 + $0x28] sm:$0xff]  }
 0x1dc   : > { %2080 = vmatprep.subr.bf16.mxu0 %v2459_v60  ;;  %2192 = vmatprep.subr.bf16.mxu1 %v2459_v60  ;;  %v2462_v63 = vld [vmem:[%s3282_s12 + $0x20] sm:$0xff]   ;;  %v2463_v0 = vld [vmem:[%s3282_s12 + $0x18] sm:$0xff]   ;;  %v2464_v1 = vld [vmem:[%s3282_s12 + $0x10] sm:$0xff]  }
 0x1dd   : > { %2081 = vmatpush3.bf16.msra.mxu0 %v2459_v60  ;;  %2200 = vmatpush3.bf16.msra.mxu1 %v2459_v60  ;;  %v2465_v2 = vld [vmem:[%s3282_s12 + $0x8] sm:$0xff]   ;;  %v2466_v3 = vld [vmem:[%s3282_s12] sm:$0xff]  }
 0x1de   : > { %2082 = vmatprep.subr.bf16.mxu0 %v2460_v61  ;;  %2193 = vmatprep.subr.bf16.mxu1 %v2460_v61 }
 0x1e1   : > { %2083 = vmatpush3.bf16.msra.mxu0 %v2460_v61  ;;  %2201 = vmatpush3.bf16.msra.mxu1 %v2460_v61 }
 0x1e2   : > { %2084 = vmatprep.subr.bf16.mxu0 %v2461_v62  ;;  %2194 = vmatprep.subr.bf16.mxu1 %v2461_v62 }
 0x1e5   : > { %2085 = vmatpush3.bf16.msra.mxu0 %v2461_v62  ;;  %2202 = vmatpush3.bf16.msra.mxu1 %v2461_v62 }
 0x1e6   : > { %2086 = vmatprep.subr.bf16.mxu0 %v2462_v63  ;;  %2195 = vmatprep.subr.bf16.mxu1 %v2462_v63 }
 0x1e9   : > { %2087 = vmatpush3.bf16.msra.mxu0 %v2462_v63  ;;  %2203 = vmatpush3.bf16.msra.mxu1 %v2462_v63 }
 0x1ea   : > { %2088 = vmatprep.subr.bf16.mxu0 %v2463_v0  ;;  %2196 = vmatprep.subr.bf16.mxu1 %v2463_v0 }
 0x1ed   : > { %2089 = vmatpush3.bf16.msra.mxu0 %v2463_v0  ;;  %2204 = vmatpush3.bf16.msra.mxu1 %v2463_v0 }
 0x1ee   : > { %2090 = vmatprep.subr.bf16.mxu0 %v2464_v1  ;;  %2197 = vmatprep.subr.bf16.mxu1 %v2464_v1 }
 0x1f1   : > { %2091 = vmatpush3.bf16.msra.mxu0 %v2464_v1  ;;  %2205 = vmatpush3.bf16.msra.mxu1 %v2464_v1 }
 0x1f2   : > { %2092 = vmatprep.subr.bf16.mxu0 %v2465_v2  ;;  %2198 = vmatprep.subr.bf16.mxu1 %v2465_v2 }
 0x1f5   : > { %2093 = vmatpush3.bf16.msra.mxu0 %v2465_v2  ;;  %2206 = vmatpush3.bf16.msra.mxu1 %v2465_v2 }
 0x1f6   : > { %2094 = vmatprep.subr.bf16.mxu0 %v2466_v3  ;;  %2199 = vmatprep.subr.bf16.mxu1 %v2466_v3 }
 0x1f9   : > { %2095 = vmatpush3.bf16.msra.mxu0 %v2466_v3  ;;  %2207 = vmatpush3.bf16.msra.mxu1 %v2466_v3 }
 0x1fc   : > { %2097 = vmatmul.mubr.bf16.vlgmr.msra.gmra.mxu0 %v2469_v4  ;;  %2105 = vmatmul.mubr.bf16.vlgmr.msra.gmra.mxu1 %v2470_v5 }
 0x1fd   : > { %2100 = vmatprep.mubr.bf16.mxu0 %v2471_v6  ;;  %2108 = vmatprep.mubr.bf16.mxu1 %v2472_v7 }
 0x204   : > { %2101 = vmatmul.mubr.bf16.gmra.mxu0 %v2473_v8  ;;  %2109 = vmatmul.mubr.bf16.gmra.mxu1 %v2474_v9 }
 0x2bc   : > { %v2098_v12 = vpop.f32.mrf.mxu0  ;;  %v2106_v13 = vpop.f32.mrf.mxu1 }
 0x2bd   : > { %v1028_v16 = vadd.f32 %v2098_v12, %v782_v10  ;;  %v1036_v17 = vadd.f32 %v2106_v13, %v790_v11 }
 0x2be   : > { %v963_v18 = vpop.f32.mrf.mxu0  ;;  %v995_v19 = vpop.f32.mrf.mxu1 }
 0x2bf   : > { %1044 = vst [vmem:[#allocation3 + $0x58] sm:$0xff] %v1028_v16  ;;  %1052 = vst [vmem:[#allocation3 + $0x10] sm:$0xff] %v1036_v17  ;;  %v1026_v22 = vadd.f32 %v963_v18, %v780_v14  ;;  %v1034_v23 = vadd.f32 %v995_v19, %v788_v15 }
 0x2c0   : > { %v2099_v24 = vpop.f32.mrf.mxu0  ;;  %v2107_v25 = vpop.f32.mrf.mxu1 }
 0x2c1   : > { %1042 = vst [vmem:[#allocation3 + $0x30] sm:$0xff] %v1026_v22  ;;  %1050 = vst [vmem:[#allocation3 + $0x40] sm:$0xff] %v1034_v23  ;;  %v1029_v28 = vadd.f32 %v2099_v24, %v783_v20  ;;  %v1037_v29 = vadd.f32 %v2107_v25, %v791_v21 }
 0x2c2   : > { %v966_v30 = vpop.f32.mrf.mxu0  ;;  %v998_v31 = vpop.f32.mrf.mxu1 }
 0x2c3   : > { %1045 = vst [vmem:[#allocation3 + $0x18] sm:$0xff] %v1029_v28  ;;  %1053 = vst [vmem:[#allocation3 + $0x38] sm:$0xff] %v1037_v29  ;;  %v1027_v34 = vadd.f32 %v966_v30, %v781_v26  ;;  %v1035_v35 = vadd.f32 %v998_v31, %v789_v27 }
 0x2c4   : > { %v2102_v36 = vpop.f32.mrf.mxu0  ;;  %v2110_v37 = vpop.f32.mrf.mxu1 }
 0x2c5   : > { %1043 = vst [vmem:[#allocation3] sm:$0xff] %v1027_v34  ;;  %1051 = vst [vmem:[#allocation3 + $0x20] sm:$0xff] %v1035_v35  ;;  %v1032_v40 = vadd.f32 %v2102_v36, %v786_v32  ;;  %v1040_v41 = vadd.f32 %v2110_v37, %v794_v33 }
 0x2c6   : > { %v979_v42 = vpop.f32.mrf.mxu0  ;;  %v1011_v43 = vpop.f32.mrf.mxu1 }
 0x2c7   : > { %1048 = vst [vmem:[#allocation3 + $0x8] sm:$0xff] %v1032_v40  ;;  %1056 = vst [vmem:[#allocation3 + $0x78] sm:$0xff] %v1040_v41  ;;  %v1030_v46 = vadd.f32 %v979_v42, %v784_v38  ;;  %v1038_v47 = vadd.f32 %v1011_v43, %v792_v39 }
 0x2c8   : > { %v2103_v48 = vpop.f32.mrf.mxu0  ;;  %v2111_v49 = vpop.f32.mrf.mxu1 }
 0x2c9   : > { %1046 = vst [vmem:[#allocation3 + $0x50] sm:$0xff] %v1030_v46  ;;  %1054 = vst [vmem:[#allocation3 + $0x60] sm:$0xff] %v1038_v47  ;;  %v1033_v52 = vadd.f32 %v2103_v48, %v787_v44  ;;  %v1041_v53 = vadd.f32 %v2111_v49, %v795_v45  ;;  %1061 = sbr.rel (%p1807_p8) target bundleno = 1219 (0x4c3), region = 80 }
 0x2ca   : > { %v982_v54 = vpop.f32.mrf.mxu0  ;;  %v1014_v55 = vpop.f32.mrf.mxu1 }
 0x2cb   : > { %1049 = vst [vmem:[#allocation3 + $0x48] sm:$0xff] %v1033_v52  ;;  %1057 = vst [vmem:[#allocation3 + $0x28] sm:$0xff] %v1041_v53  ;;  %v1031_v56 = vadd.f32 %v982_v54, %v785_v50  ;;  %v1039_v57 = vadd.f32 %v1014_v55, %v793_v51 }
 0x2cd   : > { %1047 = vst [vmem:[#allocation3 + $0x68] sm:$0xff] %v1031_v56  ;;  %1055 = vst [vmem:[#allocation3 + $0x70] sm:$0xff] %v1039_v57 }
 0x2ce   : > { %v2475_v58 = vld [vmem:[%s3246_s2 + $0x38] sm:$0xff]   ;;  %v2476_v59 = vld [vmem:[%s3246_s2 + $0x30] sm:$0xff]   ;;  %v2477_v60 = vld [vmem:[%s3246_s2 + $0x28] sm:$0xff]   ;;  %s3541_s20 = sld [smem:[#allocation41_spill]] (!%p1838_p7) }
 0x2cf   : > { %2112 = vmatprep.subr.bf16.mxu0 %v2475_v58  ;;  %2208 = vmatprep.subr.bf16.mxu1 %v2475_v58  ;;  %v2478_v61 = vld [vmem:[%s3246_s2 + $0x20] sm:$0xff]   ;;  %v1078_v62 = vld [vmem:[#allocation3 + $0x30] sm:$0xff]  ;;  %v2479_v4 = vld [vmem:[%s3246_s2 + $0x18] sm:$0xff]  }
 0x2d0   : > { %2113 = vmatpush3.bf16.msra.mxu0 %v2475_v58  ;;  %2216 = vmatpush3.bf16.msra.mxu1 %v2475_v58  ;;  %v1079_v63 = vld [vmem:[#allocation3] sm:$0xff]  ;;  %v2480_v5 = vld [vmem:[%s3246_s2 + $0x10] sm:$0xff]   ;;  %v2481_v6 = vld [vmem:[%s3246_s2 + $0x8] sm:$0xff]  }
 0x2d1   : > { %2114 = vmatprep.subr.bf16.mxu0 %v2476_v59  ;;  %2209 = vmatprep.subr.bf16.mxu1 %v2476_v59  ;;  %v1086_v0 = vld [vmem:[#allocation3 + $0x40] sm:$0xff]  ;;  %v1094_v1 = vpack.c.bf16 %v1079_v63, %v1078_v62  ;;  %v1080_v8 = vld [vmem:[#allocation3 + $0x58] sm:$0xff]  ;;  %v1088_v10 = vld [vmem:[#allocation3 + $0x10] sm:$0xff] }
 0x2d2   : > { %v1087_v2 = vld [vmem:[#allocation3 + $0x20] sm:$0xff]  ;;  %v1081_v9 = vld [vmem:[#allocation3 + $0x18] sm:$0xff]  ;;  %v1082_v12 = vld [vmem:[#allocation3 + $0x50] sm:$0xff] }
 0x2d3   : > { %v1098_v3 = vpack.c.bf16 %v1087_v2, %v1086_v0  ;;  %2128 = vmatprep.mubr.bf16.mxu0 %v1094_v1  ;;  %v2482_v7 = vld [vmem:[%s3246_s2] sm:$0xff]   ;;  %v1089_v11 = vld [vmem:[#allocation3 + $0x38] sm:$0xff]  ;;  %v1095_v16 = vpack.c.bf16 %v1081_v9, %v1080_v8  ;;  %v1084_v20 = vld [vmem:[#allocation3 + $0x8] sm:$0xff]  ;;  %s1271_s2 = sadd.s32 1, %s3539_s27 }
 0x2d4   : > { %2115 = vmatpush3.bf16.msra.mxu0 %v2476_v59  ;;  %2217 = vmatpush3.bf16.msra.mxu1 %v2476_v59  ;;  %v1083_v13 = vld [vmem:[#allocation3 + $0x68] sm:$0xff]  ;;  %v1090_v14 = vld [vmem:[#allocation3 + $0x60] sm:$0xff]  ;;  %v1091_v15 = vld [vmem:[#allocation3 + $0x70] sm:$0xff]  ;;  %v1099_v17 = vpack.c.bf16 %v1089_v11, %v1088_v10  ;;  %s1273_s28 = ssub.s32 0, %s1271_s2  ;;  %p1272_p9 = scmp.lt.s32.totalorder %s1271_s2, 0 }
 0x2d5   : > { %2116 = vmatprep.subr.bf16.mxu0 %v2477_v60  ;;  %2210 = vmatprep.subr.bf16.mxu1 %v2477_v60  ;;  %v1096_v18 = vpack.c.bf16 %v1083_v13, %v1082_v12  ;;  %v1100_v19 = vpack.c.bf16 %v1091_v15, %v1090_v14  ;;  %v1085_v21 = vld [vmem:[#allocation3 + $0x48] sm:$0xff]  ;;  %v1092_v22 = vld [vmem:[#allocation3 + $0x78] sm:$0xff]  ;;  %s1816_s29 = smin.u32 %s1273_s28, %s1271_s2 }
 0x2d6   : > { %2136 = vmatprep.mubr.bf16.mxu1 %v1098_v3  ;;  %v1093_v23 = vld [vmem:[#allocation3 + $0x28] sm:$0xff]  ;;  %v1097_v24 = vpack.c.bf16 %v1085_v21, %v1084_v20  ;;  %s1275_s4 = sand.u32 1, %s1816_s29  }
 0x2d7   : > { %v1101_v25 = vpack.c.bf16 %v1093_v23, %v1092_v22  ;;  %s1276_s21 = ssub.s32 0, %s1275_s4 }
 0x2d8   : > { %2117 = vmatpush3.bf16.msra.mxu0 %v2477_v60  ;;  %2218 = vmatpush3.bf16.msra.mxu1 %v2477_v60  ;;  %s3589_s21 = smov (!%p1272_p9, %s1276_s21), %s1275_s4 }
 0x2d9   : > { %2118 = vmatprep.subr.bf16.mxu0 %v2478_v61  ;;  %2211 = vmatprep.subr.bf16.mxu1 %v2478_v61  ;;  %p1818_p5 = scmp.lt.s32.totalorder %s3589_s21, 0  ;;  %s1282_s6 = sadd.s32 2, %s3589_s21 }
 0x2db   : > { %s3591_s6 = smov (!%p1818_p5, %s1282_s6), %s3589_s21 }
 0x2dc   : > { %2119 = vmatpush3.bf16.msra.mxu0 %v2478_v61  ;;  %2219 = vmatpush3.bf16.msra.mxu1 %v2478_v61  ;;  %s1836_s13 = sshll.u32 %s3591_s6, 5 }
 0x2dd   : > { %2120 = vmatprep.subr.bf16.mxu0 %v2479_v4  ;;  %2212 = vmatprep.subr.bf16.mxu1 %v2479_v4  ;;  %s1342_s23 = sadd.s32 %s1836_s13, %s1835_s7 }
 0x2de   : > { %s1837_s14 = sshll.u32 %s1342_s23, 2 }
 0x2df   : > { %s1344_s3 = scalar_lea.vmem [#allocation2], %s1837_s14 }
 0x2e0   : > { %2121 = vmatpush3.bf16.msra.mxu0 %v2479_v4  ;;  %2220 = vmatpush3.bf16.msra.mxu1 %v2479_v4 }
 0x2e1   : > { %2122 = vmatprep.subr.bf16.mxu0 %v2480_v5  ;;  %2213 = vmatprep.subr.bf16.mxu1 %v2480_v5 }
 0x2e4   : > { %2123 = vmatpush3.bf16.msra.mxu0 %v2480_v5  ;;  %2221 = vmatpush3.bf16.msra.mxu1 %v2480_v5 }
 0x2e5   : > { %2124 = vmatprep.subr.bf16.mxu0 %v2481_v6  ;;  %2214 = vmatprep.subr.bf16.mxu1 %v2481_v6 }
 0x2e8   : > { %2125 = vmatpush3.bf16.msra.mxu0 %v2481_v6  ;;  %2222 = vmatpush3.bf16.msra.mxu1 %v2481_v6 }
 0x2e9   : > { %2126 = vmatprep.subr.bf16.mxu0 %v2482_v7  ;;  %2215 = vmatprep.subr.bf16.mxu1 %v2482_v7 }
 0x2ec   : > { %2127 = vmatpush3.bf16.msra.mxu0 %v2482_v7  ;;  %2223 = vmatpush3.bf16.msra.mxu1 %v2482_v7 }
 0x2ef   : > { %2129 = vmatmul.mubr.bf16.vlgmr.msra.gmra.mxu0 %v1095_v16  ;;  %2137 = vmatmul.mubr.bf16.vlgmr.msra.gmra.mxu1 %v1099_v17 }
 0x2f0   : > { %2132 = vmatprep.mubr.bf16.mxu0 %v1096_v18  ;;  %2140 = vmatprep.mubr.bf16.mxu1 %v1100_v19 }
 0x2f7   : > { %2133 = vmatmul.mubr.bf16.gmra.mxu0 %v1097_v24  ;;  %2141 = vmatmul.mubr.bf16.gmra.mxu1 %v1101_v25 }
 0x3af   : > { %v2130_v26 = vpop.f32.mrf.mxu0  ;;  %v2138_v27 = vpop.f32.mrf.mxu1 }
 0x3b0   : > { %2483 = vtanh.f32 %v2130_v26 }
 0x3b1   : > { %2485 = vtanh.f32 %v2138_v27  ;;  %v1184_v28 = vpop.f32.mrf.mxu0  ;;  %v1216_v29 = vpop.f32.mrf.mxu1 }
 0x3b2   : > { %2487 = vtanh.f32 %v1184_v28 }
 0x3b3   : > { %2489 = vtanh.f32 %v1216_v29  ;;  %v2131_v30 = vpop.f32.mrf.mxu0  ;;  %v2139_v31 = vpop.f32.mrf.mxu1 }
 0x3b4   : > { %2491 = vtanh.f32 %v2131_v30 }
 0x3b5   : > { %2493 = vtanh.f32 %v2139_v31  ;;  %v1187_v32 = vpop.f32.mrf.mxu0  ;;  %v1219_v33 = vpop.f32.mrf.mxu1 }
 0x3b6   : > { %2495 = vtanh.f32 %v1187_v32 }
 0x3b7   : > { %2497 = vtanh.f32 %v1219_v33  ;;  %v2134_v34 = vpop.f32.mrf.mxu0  ;;  %v2142_v35 = vpop.f32.mrf.mxu1 }
 0x3b8   : > { %2499 = vtanh.f32 %v2134_v34 }
 0x3b9   : > { %2501 = vtanh.f32 %v2142_v35  ;;  %v1200_v36 = vpop.f32.mrf.mxu0  ;;  %v1232_v37 = vpop.f32.mrf.mxu1 }
 0x3ba   : > { %2503 = vtanh.f32 %v1200_v36 }
 0x3bb   : > { %2505 = vtanh.f32 %v1232_v37  ;;  %v2135_v38 = vpop.f32.mrf.mxu0  ;;  %v2143_v39 = vpop.f32.mrf.mxu1 }
 0x3bc   : > { %2507 = vtanh.f32 %v2135_v38 }
 0x3bd   : > { %v2484_v40 = vpop.eup %2483  ;;  %2509 = vtanh.f32 %v2143_v39  ;;  %v1203_v41 = vpop.f32.mrf.mxu0 }
 0x3be   : > { %v1235_v42 = vpop.f32.mrf.mxu1  ;;  %v2486_v43 = vpop.eup %2485  ;;  %2511 = vtanh.f32 %v1203_v41 }
 0x3bf   : > { %v2488_v44 = vpop.eup %2487  ;;  %2513 = vtanh.f32 %v1235_v42 }
 0x3c0   : > { %v2490_v45 = vpop.eup %2489 }
 0x3c1   : > { %v2492_v46 = vpop.eup %2491 }
 0x3c2   : > { %v2494_v47 = vpop.eup %2493  ;;  %v3309_v48 = vpack.c.bf16 %v2492_v46, %v2484_v40 }
 0x3c3   : > { %v2496_v49 = vpop.eup %2495  ;;  %v3311_v50 = vpack.c.bf16 %v2494_v47, %v2486_v43 }
 0x3c4   : > { %v2498_v51 = vpop.eup %2497  ;;  %1977 = vst [vmem:[%s1344_s3 + $0x8] sm:$0xff] %v3309_v48   ;;  %v1263_v52 = vpack.c.bf16 %v2496_v49, %v2488_v44 }
 0x3c5   : > { %v2500_v53 = vpop.eup %2499  ;;  %1981 = vst [vmem:[%s1344_s3 + $0x28] sm:$0xff] %v3311_v50   ;;  %v1267_v54 = vpack.c.bf16 %v2498_v51, %v2490_v45 }
 0x3c6   : > { %v2502_v55 = vpop.eup %2501  ;;  %1934 = vst [vmem:[%s1344_s3] sm:$0xff] %v1263_v52  }
 0x3c7   : > { %v2504_v56 = vpop.eup %2503  ;;  %1980 = vst [vmem:[%s1344_s3 + $0x20] sm:$0xff] %v1267_v54  }
 0x3c8   : > { %v2506_v57 = vpop.eup %2505 }
 0x3c9   : > { %v2508_v58 = vpop.eup %2507 }
 0x3ca   : > { %v2510_v59 = vpop.eup %2509  ;;  %v1266_v60 = vpack.c.bf16 %v2508_v58, %v2500_v53 }
 0x3cb   : > { %v2512_v61 = vpop.eup %2511  ;;  %v1270_v62 = vpack.c.bf16 %v2510_v59, %v2502_v55  ;;  %1364 = sbr.rel (%p1838_p7) target bundleno = 1219 (0x4c3), region = 84 }
 0x3cc   : > { %v2514_v63 = vpop.eup %2513  ;;  %1979 = vst [vmem:[%s1344_s3 + $0x18] sm:$0xff] %v1266_v60   ;;  %v1265_v0 = vpack.c.bf16 %v2512_v61, %v2504_v56 }
 0x3cd   : > { %1983 = vst [vmem:[%s1344_s3 + $0x38] sm:$0xff] %v1270_v62   ;;  %v1269_v1 = vpack.c.bf16 %v2514_v63, %v2506_v57 }
 0x3ce   : > { %1978 = vst [vmem:[%s1344_s3 + $0x10] sm:$0xff] %v1265_v0  }
 0x3cf   : > { %1982 = vst [vmem:[%s1344_s3 + $0x30] sm:$0xff] %v1269_v1  }
 0x3d0   : > { %v2515_v2 = vld [vmem:[#allocation11 + $0x38] sm:$0xff]   ;;  %2160 = vmatprep.mubr.bf16.mxu0 %v1263_v52  ;;  %2168 = vmatprep.mubr.bf16.mxu1 %v1267_v54  ;;  %v2516_v3 = vld [vmem:[#allocation11 + $0x30] sm:$0xff]   ;;  %v2517_v4 = vld [vmem:[#allocation11 + $0x28] sm:$0xff]  }
 0x3d1   : > { %2144 = vmatprep.subr.bf16.mxu0 %v2515_v2  ;;  %2224 = vmatprep.subr.bf16.mxu1 %v2515_v2  ;;  %v2518_v5 = vld [vmem:[#allocation11 + $0x20] sm:$0xff]   ;;  %v2519_v6 = vld [vmem:[#allocation11 + $0x18] sm:$0xff]   ;;  %v2520_v7 = vld [vmem:[#allocation11 + $0x10] sm:$0xff]  }
 0x3d2   : > { %2145 = vmatpush3.bf16.msra.mxu0 %v2515_v2  ;;  %2232 = vmatpush3.bf16.msra.mxu1 %v2515_v2  ;;  %v2521_v8 = vld [vmem:[#allocation11 + $0x8] sm:$0xff]   ;;  %v2522_v9 = vld [vmem:[#allocation11] sm:$0xff]  }
 0x3d3   : > { %2146 = vmatprep.subr.bf16.mxu0 %v2516_v3  ;;  %2225 = vmatprep.subr.bf16.mxu1 %v2516_v3  ;;  %v1839_v10 = vld [vmem:[%s3541_s20] ss:$0 sm:$0xff] }
 0x3d6   : > { %2147 = vmatpush3.bf16.msra.mxu0 %v2516_v3  ;;  %2233 = vmatpush3.bf16.msra.mxu1 %v2516_v3 }
 0x3d7   : > { %2148 = vmatprep.subr.bf16.mxu0 %v2517_v4  ;;  %2226 = vmatprep.subr.bf16.mxu1 %v2517_v4 }
 0x3da   : > { %2149 = vmatpush3.bf16.msra.mxu0 %v2517_v4  ;;  %2234 = vmatpush3.bf16.msra.mxu1 %v2517_v4 }
 0x3db   : > { %2150 = vmatprep.subr.bf16.mxu0 %v2518_v5  ;;  %2227 = vmatprep.subr.bf16.mxu1 %v2518_v5 }
 0x3de   : > { %2151 = vmatpush3.bf16.msra.mxu0 %v2518_v5  ;;  %2235 = vmatpush3.bf16.msra.mxu1 %v2518_v5 }
 0x3df   : > { %2152 = vmatprep.subr.bf16.mxu0 %v2519_v6  ;;  %2228 = vmatprep.subr.bf16.mxu1 %v2519_v6 }
 0x3e2   : > { %2153 = vmatpush3.bf16.msra.mxu0 %v2519_v6  ;;  %2236 = vmatpush3.bf16.msra.mxu1 %v2519_v6 }
 0x3e3   : > { %2154 = vmatprep.subr.bf16.mxu0 %v2520_v7  ;;  %2229 = vmatprep.subr.bf16.mxu1 %v2520_v7 }
 0x3e6   : > { %2155 = vmatpush3.bf16.msra.mxu0 %v2520_v7  ;;  %2237 = vmatpush3.bf16.msra.mxu1 %v2520_v7 }
 0x3e7   : > { %2156 = vmatprep.subr.bf16.mxu0 %v2521_v8  ;;  %2230 = vmatprep.subr.bf16.mxu1 %v2521_v8 }
 0x3ea   : > { %2157 = vmatpush3.bf16.msra.mxu0 %v2521_v8  ;;  %2238 = vmatpush3.bf16.msra.mxu1 %v2521_v8 }
 0x3eb   : > { %2158 = vmatprep.subr.bf16.mxu0 %v2522_v9  ;;  %2231 = vmatprep.subr.bf16.mxu1 %v2522_v9 }
 0x3ee   : > { %2159 = vmatpush3.bf16.msra.mxu0 %v2522_v9  ;;  %2239 = vmatpush3.bf16.msra.mxu1 %v2522_v9 }
 0x3f1   : > { %2161 = vmatmul.mubr.bf16.vlgmr.msra.gmra.mxu0 %v3309_v48  ;;  %2169 = vmatmul.mubr.bf16.vlgmr.msra.gmra.mxu1 %v3311_v50 }
 0x3f2   : > { %2164 = vmatprep.mubr.bf16.mxu0 %v1265_v0  ;;  %2172 = vmatprep.mubr.bf16.mxu1 %v1269_v1 }
 0x3f9   : > { %2165 = vmatmul.mubr.bf16.gmra.mxu0 %v1266_v60  ;;  %2173 = vmatmul.mubr.bf16.gmra.mxu1 %v1270_v62 }
 0x4b1   : > { %v2162_v11 = vpop.f32.mrf.mxu0  ;;  %v2170_v12 = vpop.f32.mrf.mxu1 }
 0x4b2   : > { %v1479_v13 = vadd.f32 %v2162_v11, %v1839_v10  ;;  %v1511_v14 = vadd.f32 %v2170_v12, %v1839_v10 }
 0x4b3   : > { %v1470_v15 = vpop.f32.mrf.mxu0  ;;  %v1502_v16 = vpop.f32.mrf.mxu1 }
 0x4b4   : > { %1535 = vst [vmem:[%s3261_s0 + $0x10] sm:$0xff] %v1479_v13  ;;  %1543 = vst [vmem:[%s3261_s0 + $0x50] sm:$0xff] %v1511_v14  ;;  %v1471_v17 = vadd.f32 %v1839_v10, %v1470_v15  ;;  %v1503_v18 = vadd.f32 %v1839_v10, %v1502_v16 }
 0x4b5   : > { %v2163_v19 = vpop.f32.mrf.mxu0  ;;  %v2171_v20 = vpop.f32.mrf.mxu1 }
 0x4b6   : > { %1533 = vst [vmem:[%s3261_s0] sm:$0xff] %v1471_v17  ;;  %1541 = vst [vmem:[%s3261_s0 + $0x40] sm:$0xff] %v1503_v18  ;;  %v1482_v21 = vadd.f32 %v2163_v19, %v1839_v10  ;;  %v1514_v22 = vadd.f32 %v2171_v20, %v1839_v10 }
 0x4b7   : > { %v1473_v23 = vpop.f32.mrf.mxu0  ;;  %v1505_v24 = vpop.f32.mrf.mxu1 }
 0x4b8   : > { %1536 = vst [vmem:[%s3261_s0 + $0x18] sm:$0xff] %v1482_v21  ;;  %1544 = vst [vmem:[%s3261_s0 + $0x58] sm:$0xff] %v1514_v22  ;;  %v1474_v25 = vadd.f32 %v1839_v10, %v1473_v23  ;;  %v1506_v26 = vadd.f32 %v1839_v10, %v1505_v24 }
 0x4b9   : > { %v2166_v27 = vpop.f32.mrf.mxu0  ;;  %v2174_v28 = vpop.f32.mrf.mxu1 }
 0x4ba   : > { %1534 = vst [vmem:[%s3261_s0 + $0x8] sm:$0xff] %v1474_v25  ;;  %1542 = vst [vmem:[%s3261_s0 + $0x48] sm:$0xff] %v1506_v26  ;;  %v1495_v29 = vadd.f32 %v2166_v27, %v1839_v10  ;;  %v1527_v30 = vadd.f32 %v2174_v28, %v1839_v10 }
 0x4bb   : > { %v1486_v31 = vpop.f32.mrf.mxu0  ;;  %v1518_v32 = vpop.f32.mrf.mxu1 }
 0x4bc   : > { %1539 = vst [vmem:[%s3261_s0 + $0x30] sm:$0xff] %v1495_v29  ;;  %1547 = vst [vmem:[%s3261_s0 + $0x70] sm:$0xff] %v1527_v30  ;;  %v1487_v33 = vadd.f32 %v1839_v10, %v1486_v31  ;;  %v1519_v34 = vadd.f32 %v1839_v10, %v1518_v32 }
 0x4bd   : > { %v2167_v35 = vpop.f32.mrf.mxu0  ;;  %v2175_v36 = vpop.f32.mrf.mxu1 }
 0x4be   : > { %1537 = vst [vmem:[%s3261_s0 + $0x20] sm:$0xff] %v1487_v33  ;;  %1545 = vst [vmem:[%s3261_s0 + $0x60] sm:$0xff] %v1519_v34  ;;  %v1498_v37 = vadd.f32 %v2167_v35, %v1839_v10  ;;  %v1530_v38 = vadd.f32 %v2175_v36, %v1839_v10 }
 0x4bf   : > { %v1489_v39 = vpop.f32.mrf.mxu0  ;;  %v1521_v40 = vpop.f32.mrf.mxu1 }
 0x4c0   : > { %1540 = vst [vmem:[%s3261_s0 + $0x38] sm:$0xff] %v1498_v37  ;;  %1548 = vst [vmem:[%s3261_s0 + $0x78] sm:$0xff] %v1530_v38  ;;  %v1490_v41 = vadd.f32 %v1839_v10, %v1489_v39  ;;  %v1522_v42 = vadd.f32 %v1839_v10, %v1521_v40 }
 0x4c2   : > { %1538 = vst [vmem:[%s3261_s0 + $0x28] sm:$0xff] %v1490_v41  ;;  %1546 = vst [vmem:[%s3261_s0 + $0x68] sm:$0xff] %v1522_v42 }
 0x4c3 PF: > { %s3542_s22 = sld [smem:[#allocation25_spill]]  ;;  %s1563_s21 = sshll.u32 %s3261_s0, 4  ;;  %s3344_s21 = int_to_ptr.vmem [resolvable:$true] %s1563_s21 }
 0x4c4   : > { %s3543_s28 = sld [smem:[#allocation42_spill]]  ;;  %s3348_s18 = scalar_lea.sflag [#allocation6], %s420_s17 }
 0x4c5   : > { %s2659_s6 = scalar_lea.vmem %s3344_s21, 2048  ;;  %p3545_p2 = scmp.ne.s32.totalorder %s3498_s30, 0 }
 0x4c6   : > { %p2660_p4 = scmp.ne.s32.totalorder %s3344_s21, %s2659_s6  ;;  %s2870_s7 = smov [#allocation12]  }
 0x4c7   : > { %s2663_s13 = sshll.u32 %s2870_s7, 4  ;;  %s2664_s13 = int_to_ptr.vmem [resolvable:$false] %s2663_s13 }
 0x4c8   : > { %p2661_p6 = pnand %p2660_p4, %p3545_p2  ;;  %s2665_s23 = scalar_lea.vmem %s2664_s13, 4096 }
 0x4c9   : > { %s1889_s12 = sshll.u32 %s3542_s22, 11  ;;  %p2666_p10 = scmp.lt.s32.totalorder %s3344_s21, %s2664_s13 }
 0x4ca   : > { %s3544_s4 = smov %s3543_s28  ;;  %s3341_s29 = scalar_lea.hbm %s3543_s28, %s1889_s12 }
 0x4cb   : > { %p2662_p12 = pneg %p2661_p6  ;;  %p2667_p0 = scmp.lt.s32.totalorder %s2665_s23, %s2659_s6 }
 0x4cd   : > { %p2668_p1 = por %p2667_p0, %p2666_p10 }
 0x4cf   : > { %p2669_p13 = pnand %p2668_p1, %p2662_p12 }
 0x4d1   : > { %2672 = shalt.err (!%p2669_p13)
}
 0x4d2   : > { %s2673_s17 = scalar_lea.hbm %s3341_s29, 2048  ;;  %s2677_s3 = scalar_lea.hbm %s3544_s4, 4096 }
 0x4d3   : > { %p2674_p11 = scmp.ne.s32.totalorder %s3341_s29, %s2673_s17  ;;  %p2678_p9 = scmp.lt.s32.totalorder %s3341_s29, %s3544_s4 }
 0x4d4   : > { %p2679_p5 = scmp.lt.s32.totalorder %s2677_s3, %s2673_s17 }
 0x4d5   : > { %p2675_p3 = pnand %p2674_p11, %p3545_p2 }
 0x4d6   : > { %p2680_p7 = por %p2679_p5, %p2678_p9 }
 0x4d7   : > { %p2676_p8 = pneg %p2675_p3 }
 0x4d9   : > { %p2681_p4 = pnand %p2680_p7, %p2676_p8 }
 0x4db   : > { %2684 = shalt.err (!%p2681_p4)
}
 0x4dc   : > { %s2871_s20 = smov 128   ;;  %s2872_s22 = smov 8  }
 0x4dd   : > { %2254 = dma.vmem_to_hbm [thread:$0]  (%p3545_p2), %s3344_s21, 2048, %s3341_s29, %s3348_s18, %s2871_s20, %s2871_s20, %s2872_s22  }
 0x4de PF: > { %s3546_s12 = sld [smem:[#allocation34_spill]]  ;;  %p2282_p6 = scmp.ge.s32.totalorder %s2859_s19, 2 }
 0x4df   : > { %s1578_s27 = sand.u32 1, %s2787_s24  }
 0x4e0   : > { %s1579_s2 = scalar_lea.sflag [#allocation6], %s1578_s27 }
 0x4e4   : > { %p3547_p12 = scmp.ne.s32.totalorder %s3546_s12, 0 }
 0x4e6   : > { %p2274_p10 = pnand %p2282_p6, %p3547_p12 }
 0x4e8   : > { %p2275_p0 = pneg %p2274_p10 }
 0x4ea   : > { %2782 = dma.done.wait (%p2275_p0), %s1579_s2, 2048  }
 0x4eb   : > { %2784 = vsyncadd (%p2275_p0), %s1579_s2, 4294965248  ;;  %s24_s19 = sadd.s32 1, %s2859_s19   ;;  %s3549_s30 = sld [smem:[#allocation19_spill]] }
 0x4ec   : > { %p3376_p1 = scmp.ge.s32.totalorder %s24_s19, 10   ;;  %s3550_s26 = sld [smem:[#allocation33_spill]] }
 0x4ed   : > { %s3551_s27 = sld [smem:[#allocation21_spill]]  ;;  %s3559_s24 = smov %s2791_s25 }
 0x4ee   : > { %s3552_s29 = sld [smem:[#allocation22_spill]]  ;;  %s3568_s10 = smov %s2827_s11 }
 0x4ef   : > { %s3553_s21 = sld [smem:[#allocation35_spill]]  ;;  %s3570_s13 = smov %s2847_s16 }
 0x4f0   : > { %s3554_s18 = sld [smem:[#allocation23_spill]] }
 0x4f1   : > { %s3555_s12 = sld [smem:[#allocation32_spill]]  ;;  %s3561_s25 = smov %s3549_s30 }
 0x4f2   : > { %s3556_s14 = sld [smem:[#allocation27_spill]]  ;;  %s3565_s30 = smov %s2815_s8 }
 0x4f3   : > { %s3557_s6 = sld [smem:[#allocation28_spill]]  ;;  %s3566_s8 = smov %s2819_s9 }
 0x4f4   : > { %s3558_s7 = sld [smem:[#allocation29_spill]]  ;;  %s3563_s28 = smov %s3552_s29 }
 0x4f5   : > { %s3560_s17 = sld [smem:[#allocation31_spill]]  ;;  %s3564_s29 = smov %s3583_s15 }
 0x4f6   : > { %s3567_s9 = smov %s3553_s21  ;;  %s3569_s11 = smov %s3554_s18 }
 0x4f7   : > { %s3573_s18 = smov %s3581_s5  ;;  %23 = sbr.rel (!%p3376_p1) target bundleno = 22 (0x16), region = 142 }
 0x4f9   : > { %s3571_s15 = smov %s3557_s6 }
 0x4fa   : > { %s3572_s16 = smov %s3558_s7 }
 0x4fc   :  { %1584 = vsyncpa [#allocation5], 1 }
 0x4fd   :  { %1586 = vsyncpa [#allocation5 + $0x1], 1 }
 0x4fe   :  { %1587 = vsyncpa [#allocation8], 1 }
 0x4ff   :  { %1588 = vsyncpa [#allocation6], 1 }
 0x500   :  { %1590 = vsyncpa [#allocation6 + $0x1], 1 }

</bundles_post_ra>
